<compile_context>
chip_gen: v7x
topology: tpu7x:2x2x1
jax: 0.10.0
libtpu: 0.0.40
codegen_flags: <defaults>
</compile_context>

<pallas_src>
import numpy as np
import jax
import jax.numpy as jnp
from jax.experimental import pallas as pl
from jax.experimental.pallas import tpu as pltpu

INPUT_SIZE = 4
HIDDEN_SIZE = 16
OUTPUT_SIZE = 3
NUM_LAYERS = 2            # hard-wired as two explicit layers below
GATES = 4 * HIDDEN_SIZE   # 64

# ---- packed weight blob layout -------------------------------------------
# (BLOB_ROWS, 128) f32; every sub-view starts on an 8-row boundary and lane 0
# so in-kernel static slices need no sublane/lane rotation.
R_WIH0 = 0      # rows 0:4    (I, 4H)   layer-0 input->gates  (transposed)
R_WHH0 = 8      # rows 8:24   (H, 4H)   layer-0 hidden->gates (transposed)
R_WIH1 = 24     # rows 24:40  (H, 4H)   layer-1 input->gates  (transposed)
R_WHH1 = 40     # rows 40:56  (H, 4H)   layer-1 hidden->gates (transposed)
R_WOUT = 56     # rows 56:72  (H, 128)  head weight, transposed, lane-padded
R_B0 = 72       # row 72      (1, 4H)   bias_ih0 + bias_hh0
R_B1 = 80       # row 80      (1, 4H)   bias_ih1 + bias_hh1
R_BOUT = 88     # row 88      (1, 128)  head bias, lane-padded
BLOB_ROWS = 96


def lstm_net_kernel(x_ref, w_ref, o_ref):
    """2-layer LSTM recurrence (last batch row only) + Linear head.

    x_ref: (T, B, I)          full input; last batch row selected in-kernel
    w_ref: (BLOB_ROWS, 128)   packed weights/biases (single DMA)
    o_ref: (T, OUTPUT_SIZE)   final output
    """
    T, B, _ = x_ref.shape
    H = HIDDEN_SIZE
    G = GATES

    # --- static, tile-aligned sub-views of the packed blob (one DMA) -------
    wih0 = w_ref[R_WIH0:R_WIH0 + INPUT_SIZE, :G]   # (I, 4H)
    whh0 = w_ref[R_WHH0:R_WHH0 + H, :G]            # (H, 4H)
    wih1 = w_ref[R_WIH1:R_WIH1 + H, :G]            # (H, 4H)
    whh1 = w_ref[R_WHH1:R_WHH1 + H, :G]            # (H, 4H)
    wout = w_ref[R_WOUT:R_WOUT + H, :]             # (H, 128) zero-padded
    b0 = w_ref[R_B0:R_B0 + 1, :G]                  # (1, 4H)
    b1 = w_ref[R_B1:R_B1 + 1, :G]                  # (1, 4H)
    bout = w_ref[R_BOUT:R_BOUT + 1, :]             # (1, 128) zero-padded

    # --- gather last batch row in-kernel (kills the wrapper slice kernel) --
    # 8 tiny aligned loads + one sublane concat, prologue-only cost.
    x_last = jnp.concatenate([x_ref[t, B - 1:B, :] for t in range(T)], axis=0)  # (T, I)

    # Hoisted layer-0 input projection: ONE matmul covering all T steps,
    # independent of the recurrence.
    gx0 = jnp.dot(x_last, wih0, preferred_element_type=jnp.float32) + b0        # (T, 4H)

    def gates_to_state(g, c):
        # PyTorch gate order: i, f, g, o. One WIDE sigmoid over all 64 lanes,
        # one narrow tanh for the g-gate, one tanh for the new cell state.
        sg = jax.nn.sigmoid(g)                         # (1, 4H)
        i = sg[:, 0 * H:1 * H]
        f = sg[:, 1 * H:2 * H]
        o = sg[:, 3 * H:4 * H]
        gg = jnp.tanh(g[:, 2 * H:3 * H])
        c_new = f * c + i * gg
        return o * jnp.tanh(c_new), c_new

    z = jnp.zeros((1, H), jnp.float32)
    h1, c1, h2, c2 = z, z, z, z
    h2_rows = []

    # Fully unrolled time loop (T static & tiny): exposes the whole dataflow
    # graph so adjacent steps' MXU/EUP work can overlap.
    for t in range(T):
        # Layer-1 hidden contribution depends only on h2_{t-1}: issue it
        # before layer 0 of this step (un-fused layer 1, no concat).
        g1_h = jnp.dot(h2, whh1, preferred_element_type=jnp.float32) + b1

        # Layer 0: only the recurrent matmul sits on the serial path.
        g0 = gx0[t:t + 1, :] + jnp.dot(h1, whh0, preferred_element_type=jnp.float32)
        h1, c1 = gates_to_state(g0, c1)

        # Layer 1: add the h1-dependent half only after layer 0 finishes.
        g1 = g1_h + jnp.dot(h1, wih1, preferred_element_type=jnp.float32)
        h2, c2 = gates_to_state(g1, c2)

        h2_rows.append(h2)          # collected in registers, no VMEM scratch

    # Head: concat the 8 rows, one matmul, write the (T, 3) result directly.
    outs = jnp.concatenate(h2_rows, axis=0)                                    # (T, H)
    head = jnp.dot(outs, wout, preferred_element_type=jnp.float32) + bout      # (T, 128)
    o_ref[...] = head[:, :OUTPUT_SIZE]


def prepare_kernel_params(raw):
    """Pack all raw PyTorch-layout weights into ONE (8,128)-aligned blob."""
    H, O, I = HIDDEN_SIZE, OUTPUT_SIZE, INPUT_SIZE
    blob = jnp.zeros((BLOB_ROWS, 128), jnp.float32)
    blob = blob.at[R_WIH0:R_WIH0 + I, :GATES].set(raw["wih0"].T)
    blob = blob.at[R_WHH0:R_WHH0 + H, :GATES].set(raw["whh0"].T)
    blob = blob.at[R_WIH1:R_WIH1 + H, :GATES].set(raw["wih1"].T)
    blob = blob.at[R_WHH1:R_WHH1 + H, :GATES].set(raw["whh1"].T)
    blob = blob.at[R_WOUT:R_WOUT + H, :O].set(raw["wout"].T)
    blob = blob.at[R_B0, :GATES].set(raw["bih0"] + raw["bhh0"])
    blob = blob.at[R_B1, :GATES].set(raw["bih1"] + raw["bhh1"])
    blob = blob.at[R_BOUT, :O].set(raw["bout"])
    return blob


@jax.jit
def net_forward(x, w_blob):
    """x: (T, B, I) -> (T, OUTPUT_SIZE). No pre/post wrapper slice kernels."""
    T = x.shape[0]
    vmem = pl.BlockSpec(memory_space=pltpu.MemorySpace.VMEM)
    return pl.pallas_call(
        lstm_net_kernel,
        out_shape=jax.ShapeDtypeStruct((T, OUTPUT_SIZE), jnp.float32),
        in_specs=[vmem, vmem],
        out_specs=vmem,
    )(x, w_blob)


def init_params(key, input_size=INPUT_SIZE, hidden_size=HIDDEN_SIZE,
                output_size=OUTPUT_SIZE):
    """Deterministic init mimicking PyTorch's U(-1/sqrt(H), 1/sqrt(H)), raw layout."""
    H = hidden_size
    ks = jax.random.split(key, 10)
    s = 1.0 / np.sqrt(H)

    def u(k, shape):
        return jax.random.uniform(k, shape, jnp.float32, minval=-s, maxval=s)

    return {
        "wih0": u(ks[0], (4 * H, input_size)),
        "whh0": u(ks[1], (4 * H, H)),
        "bih0": u(ks[2], (4 * H,)),
        "bhh0": u(ks[3], (4 * H,)),
        "wih1": u(ks[4], (4 * H, H)),
        "whh1": u(ks[5], (4 * H, H)),
        "bih1": u(ks[6], (4 * H,)),
        "bhh1": u(ks[7], (4 * H,)),
        "wout": u(ks[8], (output_size, H)),
        "bout": u(ks[9], (output_size,)),
    }


def net_forward_ref(x, raw):
    """Pure-JAX reference: full-batch 2-layer LSTM + head, then out[:, -1, :]."""
    T, B, _ = x.shape
    H = raw["whh0"].shape[1]
    b0 = raw["bih0"] + raw["bhh0"]
    b1 = raw["bih1"] + raw["bhh1"]

    def cell(x_t, h, c, wih, whh, b):
        g = x_t @ wih.T + h @ whh.T + b
        i = jax.nn.sigmoid(g[:, 0 * H:1 * H])
        f = jax.nn.sigmoid(g[:, 1 * H:2 * H])
        gg = jnp.tanh(g[:, 2 * H:3 * H])
        o = jax.nn.sigmoid(g[:, 3 * H:4 * H])
        c = f * c + i * gg
        return o * jnp.tanh(c), c

    def step(carry, x_t):
        h1, c1, h2, c2 = carry
        h1, c1 = cell(x_t, h1, c1, raw["wih0"], raw["whh0"], b0)
        h2, c2 = cell(h1, h2, c2, raw["wih1"], raw["whh1"], b1)
        return (h1, c1, h2, c2), h2

    z = jnp.zeros((B, H), jnp.float32)
    _, h2_seq = jax.lax.scan(step, (z, z, z, z), x)      # (T, B, H)
    last_batch = h2_seq[:, -1, :]                        # out[:, -1, :] -> (T, H)
    return last_batch @ raw["wout"].T + raw["bout"][None, :]


if __name__ == "__main__":
    key = jax.random.PRNGKey(0)
    k_x, k_p = jax.random.split(key)

    T, B = 8, 2
    x = jax.random.normal(k_x, (T, B, INPUT_SIZE), jnp.float32)
    raw_params = init_params(k_p)
    w_blob = prepare_kernel_params(raw_params)

    out = net_forward(x, w_blob)
    out = jax.block_until_ready(out)

    ref = net_forward_ref(x, raw_params)
    np.testing.assert_allclose(np.asarray(out), np.asarray(ref),
                               rtol=1e-2, atol=1e-2)
    assert out.shape == (T, OUTPUT_SIZE)

    print("KERNEL_OK")
</pallas_src>

<mosaic_0001>
module attributes {stable_mosaic.version = 11 : i64} {
  func.func @lstm_net_kernel(%arg0: memref<8x2x4xf32, #tpu.memory_space<vmem>>, %arg1: memref<96x128xf32, #tpu.memory_space<vmem>>, %arg2: memref<8x3xf32, #tpu.memory_space<vmem>>) attributes {dimension_semantics = [], scalar_prefetch = 0 : i64, scratch_operands = 0 : i64, tpu.core_type = #tpu.core_type<tc>} {
    %c0 = arith.constant 0 : index
    %c0_0 = arith.constant 0 : index
    %0 = vector.load %arg1[%c0, %c0_0] : memref<96x128xf32, #tpu.memory_space<vmem>>, vector<4x64xf32>
    %c8 = arith.constant 8 : index
    %c0_1 = arith.constant 0 : index
    %1 = vector.load %arg1[%c8, %c0_1] : memref<96x128xf32, #tpu.memory_space<vmem>>, vector<16x64xf32>
    %c24 = arith.constant 24 : index
    %c0_2 = arith.constant 0 : index
    %2 = vector.load %arg1[%c24, %c0_2] : memref<96x128xf32, #tpu.memory_space<vmem>>, vector<16x64xf32>
    %c40 = arith.constant 40 : index
    %c0_3 = arith.constant 0 : index
    %3 = vector.load %arg1[%c40, %c0_3] : memref<96x128xf32, #tpu.memory_space<vmem>>, vector<16x64xf32>
    %c56 = arith.constant 56 : index
    %c0_4 = arith.constant 0 : index
    %4 = vector.load %arg1[%c56, %c0_4] : memref<96x128xf32, #tpu.memory_space<vmem>>, vector<16x128xf32>
    %c72 = arith.constant 72 : index
    %c0_5 = arith.constant 0 : index
    %5 = vector.load %arg1[%c72, %c0_5] : memref<96x128xf32, #tpu.memory_space<vmem>>, vector<1x64xf32>
    %c80 = arith.constant 80 : index
    %c0_6 = arith.constant 0 : index
    %6 = vector.load %arg1[%c80, %c0_6] : memref<96x128xf32, #tpu.memory_space<vmem>>, vector<1x64xf32>
    %c88 = arith.constant 88 : index
    %c0_7 = arith.constant 0 : index
    %7 = vector.load %arg1[%c88, %c0_7] : memref<96x128xf32, #tpu.memory_space<vmem>>, vector<1x128xf32>
    %c0_8 = arith.constant 0 : index
    %c1 = arith.constant 1 : index
    %c0_9 = arith.constant 0 : index
    %8 = vector.load %arg0[%c0_8, %c1, %c0_9] : memref<8x2x4xf32, #tpu.memory_space<vmem>>, vector<1x1x4xf32>
    %9 = vector.shape_cast %8 : vector<1x1x4xf32> to vector<1x4xf32>
    %c1_10 = arith.constant 1 : index
    %c1_11 = arith.constant 1 : index
    %c0_12 = arith.constant 0 : index
    %10 = vector.load %arg0[%c1_10, %c1_11, %c0_12] : memref<8x2x4xf32, #tpu.memory_space<vmem>>, vector<1x1x4xf32>
    %11 = vector.shape_cast %10 : vector<1x1x4xf32> to vector<1x4xf32>
    %c2 = arith.constant 2 : index
    %c1_13 = arith.constant 1 : index
    %c0_14 = arith.constant 0 : index
    %12 = vector.load %arg0[%c2, %c1_13, %c0_14] : memref<8x2x4xf32, #tpu.memory_space<vmem>>, vector<1x1x4xf32>
    %13 = vector.shape_cast %12 : vector<1x1x4xf32> to vector<1x4xf32>
    %c3 = arith.constant 3 : index
    %c1_15 = arith.constant 1 : index
    %c0_16 = arith.constant 0 : index
    %14 = vector.load %arg0[%c3, %c1_15, %c0_16] : memref<8x2x4xf32, #tpu.memory_space<vmem>>, vector<1x1x4xf32>
    %15 = vector.shape_cast %14 : vector<1x1x4xf32> to vector<1x4xf32>
    %c4 = arith.constant 4 : index
    %c1_17 = arith.constant 1 : index
    %c0_18 = arith.constant 0 : index
    %16 = vector.load %arg0[%c4, %c1_17, %c0_18] : memref<8x2x4xf32, #tpu.memory_space<vmem>>, vector<1x1x4xf32>
    %17 = vector.shape_cast %16 : vector<1x1x4xf32> to vector<1x4xf32>
    %c5 = arith.constant 5 : index
    %c1_19 = arith.constant 1 : index
    %c0_20 = arith.constant 0 : index
    %18 = vector.load %arg0[%c5, %c1_19, %c0_20] : memref<8x2x4xf32, #tpu.memory_space<vmem>>, vector<1x1x4xf32>
    %19 = vector.shape_cast %18 : vector<1x1x4xf32> to vector<1x4xf32>
    %c6 = arith.constant 6 : index
    %c1_21 = arith.constant 1 : index
    %c0_22 = arith.constant 0 : index
    %20 = vector.load %arg0[%c6, %c1_21, %c0_22] : memref<8x2x4xf32, #tpu.memory_space<vmem>>, vector<1x1x4xf32>
    %21 = vector.shape_cast %20 : vector<1x1x4xf32> to vector<1x4xf32>
    %c7 = arith.constant 7 : index
    %c1_23 = arith.constant 1 : index
    %c0_24 = arith.constant 0 : index
    %22 = vector.load %arg0[%c7, %c1_23, %c0_24] : memref<8x2x4xf32, #tpu.memory_space<vmem>>, vector<1x1x4xf32>
    %23 = vector.shape_cast %22 : vector<1x1x4xf32> to vector<1x4xf32>
    %24 = tpu.concatenate %9, %11, %13, %15, %17, %19, %21, %23 in 0 : vector<1x4xf32>, vector<1x4xf32>, vector<1x4xf32>, vector<1x4xf32>, vector<1x4xf32>, vector<1x4xf32>, vector<1x4xf32>, vector<1x4xf32> -> vector<8x4xf32>
    %cst = arith.constant dense<0.000000e+00> : vector<8x64xf32>
    %25 = tpu.matmul %24, %0, %cst {dimension_numbers = #tpu.dot_dimension_numbers<[1], [0], [0], [1], [0, 0, 1, 1], [], []>} : vector<8x4xf32>, vector<4x64xf32>, vector<8x64xf32> -> vector<8x64xf32>
    %26 = vector.broadcast %5 : vector<1x64xf32> to vector<8x64xf32>
    %27 = arith.addf %25, %26 : vector<8x64xf32>
    %cst_25 = arith.constant 0.000000e+00 : f32
    %28 = vector.broadcast %cst_25 : f32 to vector<1x16xf32>
    %cst_26 = arith.constant dense<0.000000e+00> : vector<1x64xf32>
    %29 = tpu.matmul %28, %3, %cst_26 {dimension_numbers = #tpu.dot_dimension_numbers<[1], [0], [0], [1], [0, 0, 1, 1], [], []>} : vector<1x16xf32>, vector<16x64xf32>, vector<1x64xf32> -> vector<1x64xf32>
    %30 = arith.addf %29, %6 : vector<1x64xf32>
    %31 = vector.extract_strided_slice %27 {offsets = [0, 0], sizes = [1, 64], strides = [1, 1]} : vector<8x64xf32> to vector<1x64xf32>
    %cst_27 = arith.constant dense<0.000000e+00> : vector<1x64xf32>
    %32 = tpu.matmul %28, %1, %cst_27 {dimension_numbers = #tpu.dot_dimension_numbers<[1], [0], [0], [1], [0, 0, 1, 1], [], []>} : vector<1x16xf32>, vector<16x64xf32>, vector<1x64xf32> -> vector<1x64xf32>
    %33 = arith.addf %31, %32 : vector<1x64xf32>
    %34 = arith.negf %33 : vector<1x64xf32>
    %35 = math.exp %34 : vector<1x64xf32>
    %cst_28 = arith.constant 1.000000e+00 : f32
    %36 = vector.broadcast %cst_28 : f32 to vector<1x64xf32>
    %37 = arith.addf %36, %35 : vector<1x64xf32>
    %38 = arith.divf %36, %37 : vector<1x64xf32>
    %39 = vector.extract_strided_slice %38 {offsets = [0, 0], sizes = [1, 16], strides = [1, 1]} : vector<1x64xf32> to vector<1x16xf32>
    %40 = vector.extract_strided_slice %38 {offsets = [0, 16], sizes = [1, 16], strides = [1, 1]} : vector<1x64xf32> to vector<1x16xf32>
    %41 = vector.extract_strided_slice %38 {offsets = [0, 48], sizes = [1, 16], strides = [1, 1]} : vector<1x64xf32> to vector<1x16xf32>
    %42 = vector.extract_strided_slice %33 {offsets = [0, 32], sizes = [1, 16], strides = [1, 1]} : vector<1x64xf32> to vector<1x16xf32>
    %43 = math.tanh %42 : vector<1x16xf32>
    %44 = arith.mulf %40, %28 : vector<1x16xf32>
    %45 = arith.mulf %39, %43 : vector<1x16xf32>
    %46 = arith.addf %44, %45 : vector<1x16xf32>
    %47 = math.tanh %46 : vector<1x16xf32>
    %48 = arith.mulf %41, %47 : vector<1x16xf32>
    %cst_29 = arith.constant dense<0.000000e+00> : vector<1x64xf32>
    %49 = tpu.matmul %48, %2, %cst_29 {dimension_numbers = #tpu.dot_dimension_numbers<[1], [0], [0], [1], [0, 0, 1, 1], [], []>} : vector<1x16xf32>, vector<16x64xf32>, vector<1x64xf32> -> vector<1x64xf32>
    %50 = arith.addf %30, %49 : vector<1x64xf32>
    %51 = arith.negf %50 : vector<1x64xf32>
    %52 = math.exp %51 : vector<1x64xf32>
    %cst_30 = arith.constant 1.000000e+00 : f32
    %53 = vector.broadcast %cst_30 : f32 to vector<1x64xf32>
    %54 = arith.addf %53, %52 : vector<1x64xf32>
    %55 = arith.divf %53, %54 : vector<1x64xf32>
    %56 = vector.extract_strided_slice %55 {offsets = [0, 0], sizes = [1, 16], strides = [1, 1]} : vector<1x64xf32> to vector<1x16xf32>
    %57 = vector.extract_strided_slice %55 {offsets = [0, 16], sizes = [1, 16], strides = [1, 1]} : vector<1x64xf32> to vector<1x16xf32>
    %58 = vector.extract_strided_slice %55 {offsets = [0, 48], sizes = [1, 16], strides = [1, 1]} : vector<1x64xf32> to vector<1x16xf32>
    %59 = vector.extract_strided_slice %50 {offsets = [0, 32], sizes = [1, 16], strides = [1, 1]} : vector<1x64xf32> to vector<1x16xf32>
    %60 = math.tanh %59 : vector<1x16xf32>
    %61 = arith.mulf %57, %28 : vector<1x16xf32>
    %62 = arith.mulf %56, %60 : vector<1x16xf32>
    %63 = arith.addf %61, %62 : vector<1x16xf32>
    %64 = math.tanh %63 : vector<1x16xf32>
    %65 = arith.mulf %58, %64 : vector<1x16xf32>
    %cst_31 = arith.constant dense<0.000000e+00> : vector<1x64xf32>
    %66 = tpu.matmul %65, %3, %cst_31 {dimension_numbers = #tpu.dot_dimension_numbers<[1], [0], [0], [1], [0, 0, 1, 1], [], []>} : vector<1x16xf32>, vector<16x64xf32>, vector<1x64xf32> -> vector<1x64xf32>
    %67 = arith.addf %66, %6 : vector<1x64xf32>
    %68 = vector.extract_strided_slice %27 {offsets = [1, 0], sizes = [1, 64], strides = [1, 1]} : vector<8x64xf32> to vector<1x64xf32>
    %cst_32 = arith.constant dense<0.000000e+00> : vector<1x64xf32>
    %69 = tpu.matmul %48, %1, %cst_32 {dimension_numbers = #tpu.dot_dimension_numbers<[1], [0], [0], [1], [0, 0, 1, 1], [], []>} : vector<1x16xf32>, vector<16x64xf32>, vector<1x64xf32> -> vector<1x64xf32>
    %70 = arith.addf %68, %69 : vector<1x64xf32>
    %71 = arith.negf %70 : vector<1x64xf32>
    %72 = math.exp %71 : vector<1x64xf32>
    %cst_33 = arith.constant 1.000000e+00 : f32
    %73 = vector.broadcast %cst_33 : f32 to vector<1x64xf32>
    %74 = arith.addf %73, %72 : vector<1x64xf32>
    %75 = arith.divf %73, %74 : vector<1x64xf32>
    %76 = vector.extract_strided_slice %75 {offsets = [0, 0], sizes = [1, 16], strides = [1, 1]} : vector<1x64xf32> to vector<1x16xf32>
    %77 = vector.extract_strided_slice %75 {offsets = [0, 16], sizes = [1, 16], strides = [1, 1]} : vector<1x64xf32> to vector<1x16xf32>
    %78 = vector.extract_strided_slice %75 {offsets = [0, 48], sizes = [1, 16], strides = [1, 1]} : vector<1x64xf32> to vector<1x16xf32>
    %79 = vector.extract_strided_slice %70 {offsets = [0, 32], sizes = [1, 16], strides = [1, 1]} : vector<1x64xf32> to vector<1x16xf32>
    %80 = math.tanh %79 : vector<1x16xf32>
    %81 = arith.mulf %77, %46 : vector<1x16xf32>
    %82 = arith.mulf %76, %80 : vector<1x16xf32>
    %83 = arith.addf %81, %82 : vector<1x16xf32>
    %84 = math.tanh %83 : vector<1x16xf32>
    %85 = arith.mulf %78, %84 : vector<1x16xf32>
    %cst_34 = arith.constant dense<0.000000e+00> : vector<1x64xf32>
    %86 = tpu.matmul %85, %2, %cst_34 {dimension_numbers = #tpu.dot_dimension_numbers<[1], [0], [0], [1], [0, 0, 1, 1], [], []>} : vector<1x16xf32>, vector<16x64xf32>, vector<1x64xf32> -> vector<1x64xf32>
    %87 = arith.addf %67, %86 : vector<1x64xf32>
    %88 = arith.negf %87 : vector<1x64xf32>
    %89 = math.exp %88 : vector<1x64xf32>
    %cst_35 = arith.constant 1.000000e+00 : f32
    %90 = vector.broadcast %cst_35 : f32 to vector<1x64xf32>
    %91 = arith.addf %90, %89 : vector<1x64xf32>
    %92 = arith.divf %90, %91 : vector<1x64xf32>
    %93 = vector.extract_strided_slice %92 {offsets = [0, 0], sizes = [1, 16], strides = [1, 1]} : vector<1x64xf32> to vector<1x16xf32>
    %94 = vector.extract_strided_slice %92 {offsets = [0, 16], sizes = [1, 16], strides = [1, 1]} : vector<1x64xf32> to vector<1x16xf32>
    %95 = vector.extract_strided_slice %92 {offsets = [0, 48], sizes = [1, 16], strides = [1, 1]} : vector<1x64xf32> to vector<1x16xf32>
    %96 = vector.extract_strided_slice %87 {offsets = [0, 32], sizes = [1, 16], strides = [1, 1]} : vector<1x64xf32> to vector<1x16xf32>
    %97 = math.tanh %96 : vector<1x16xf32>
    %98 = arith.mulf %94, %63 : vector<1x16xf32>
    %99 = arith.mulf %93, %97 : vector<1x16xf32>
    %100 = arith.addf %98, %99 : vector<1x16xf32>
    %101 = math.tanh %100 : vector<1x16xf32>
    %102 = arith.mulf %95, %101 : vector<1x16xf32>
    %cst_36 = arith.constant dense<0.000000e+00> : vector<1x64xf32>
    %103 = tpu.matmul %102, %3, %cst_36 {dimension_numbers = #tpu.dot_dimension_numbers<[1], [0], [0], [1], [0, 0, 1, 1], [], []>} : vector<1x16xf32>, vector<16x64xf32>, vector<1x64xf32> -> vector<1x64xf32>
    %104 = arith.addf %103, %6 : vector<1x64xf32>
    %105 = vector.extract_strided_slice %27 {offsets = [2, 0], sizes = [1, 64], strides = [1, 1]} : vector<8x64xf32> to vector<1x64xf32>
    %cst_37 = arith.constant dense<0.000000e+00> : vector<1x64xf32>
    %106 = tpu.matmul %85, %1, %cst_37 {dimension_numbers = #tpu.dot_dimension_numbers<[1], [0], [0], [1], [0, 0, 1, 1], [], []>} : vector<1x16xf32>, vector<16x64xf32>, vector<1x64xf32> -> vector<1x64xf32>
    %107 = arith.addf %105, %106 : vector<1x64xf32>
    %108 = arith.negf %107 : vector<1x64xf32>
    %109 = math.exp %108 : vector<1x64xf32>
    %cst_38 = arith.constant 1.000000e+00 : f32
    %110 = vector.broadcast %cst_38 : f32 to vector<1x64xf32>
    %111 = arith.addf %110, %109 : vector<1x64xf32>
    %112 = arith.divf %110, %111 : vector<1x64xf32>
    %113 = vector.extract_strided_slice %112 {offsets = [0, 0], sizes = [1, 16], strides = [1, 1]} : vector<1x64xf32> to vector<1x16xf32>
    %114 = vector.extract_strided_slice %112 {offsets = [0, 16], sizes = [1, 16], strides = [1, 1]} : vector<1x64xf32> to vector<1x16xf32>
    %115 = vector.extract_strided_slice %112 {offsets = [0, 48], sizes = [1, 16], strides = [1, 1]} : vector<1x64xf32> to vector<1x16xf32>
    %116 = vector.extract_strided_slice %107 {offsets = [0, 32], sizes = [1, 16], strides = [1, 1]} : vector<1x64xf32> to vector<1x16xf32>
    %117 = math.tanh %116 : vector<1x16xf32>
    %118 = arith.mulf %114, %83 : vector<1x16xf32>
    %119 = arith.mulf %113, %117 : vector<1x16xf32>
    %120 = arith.addf %118, %119 : vector<1x16xf32>
    %121 = math.tanh %120 : vector<1x16xf32>
    %122 = arith.mulf %115, %121 : vector<1x16xf32>
    %cst_39 = arith.constant dense<0.000000e+00> : vector<1x64xf32>
    %123 = tpu.matmul %122, %2, %cst_39 {dimension_numbers = #tpu.dot_dimension_numbers<[1], [0], [0], [1], [0, 0, 1, 1], [], []>} : vector<1x16xf32>, vector<16x64xf32>, vector<1x64xf32> -> vector<1x64xf32>
    %124 = arith.addf %104, %123 : vector<1x64xf32>
    %125 = arith.negf %124 : vector<1x64xf32>
    %126 = math.exp %125 : vector<1x64xf32>
    %cst_40 = arith.constant 1.000000e+00 : f32
    %127 = vector.broadcast %cst_40 : f32 to vector<1x64xf32>
    %128 = arith.addf %127, %126 : vector<1x64xf32>
    %129 = arith.divf %127, %128 : vector<1x64xf32>
    %130 = vector.extract_strided_slice %129 {offsets = [0, 0], sizes = [1, 16], strides = [1, 1]} : vector<1x64xf32> to vector<1x16xf32>
    %131 = vector.extract_strided_slice %129 {offsets = [0, 16], sizes = [1, 16], strides = [1, 1]} : vector<1x64xf32> to vector<1x16xf32>
    %132 = vector.extract_strided_slice %129 {offsets = [0, 48], sizes = [1, 16], strides = [1, 1]} : vector<1x64xf32> to vector<1x16xf32>
    %133 = vector.extract_strided_slice %124 {offsets = [0, 32], sizes = [1, 16], strides = [1, 1]} : vector<1x64xf32> to vector<1x16xf32>
    %134 = math.tanh %133 : vector<1x16xf32>
    %135 = arith.mulf %131, %100 : vector<1x16xf32>
    %136 = arith.mulf %130, %134 : vector<1x16xf32>
    %137 = arith.addf %135, %136 : vector<1x16xf32>
    %138 = math.tanh %137 : vector<1x16xf32>
    %139 = arith.mulf %132, %138 : vector<1x16xf32>
    %cst_41 = arith.constant dense<0.000000e+00> : vector<1x64xf32>
    %140 = tpu.matmul %139, %3, %cst_41 {dimension_numbers = #tpu.dot_dimension_numbers<[1], [0], [0], [1], [0, 0, 1, 1], [], []>} : vector<1x16xf32>, vector<16x64xf32>, vector<1x64xf32> -> vector<1x64xf32>
    %141 = arith.addf %140, %6 : vector<1x64xf32>
    %142 = vector.extract_strided_slice %27 {offsets = [3, 0], sizes = [1, 64], strides = [1, 1]} : vector<8x64xf32> to vector<1x64xf32>
    %cst_42 = arith.constant dense<0.000000e+00> : vector<1x64xf32>
    %143 = tpu.matmul %122, %1, %cst_42 {dimension_numbers = #tpu.dot_dimension_numbers<[1], [0], [0], [1], [0, 0, 1, 1], [], []>} : vector<1x16xf32>, vector<16x64xf32>, vector<1x64xf32> -> vector<1x64xf32>
    %144 = arith.addf %142, %143 : vector<1x64xf32>
    %145 = arith.negf %144 : vector<1x64xf32>
    %146 = math.exp %145 : vector<1x64xf32>
    %cst_43 = arith.constant 1.000000e+00 : f32
    %147 = vector.broadcast %cst_43 : f32 to vector<1x64xf32>
    %148 = arith.addf %147, %146 : vector<1x64xf32>
    %149 = arith.divf %147, %148 : vector<1x64xf32>
    %150 = vector.extract_strided_slice %149 {offsets = [0, 0], sizes = [1, 16], strides = [1, 1]} : vector<1x64xf32> to vector<1x16xf32>
    %151 = vector.extract_strided_slice %149 {offsets = [0, 16], sizes = [1, 16], strides = [1, 1]} : vector<1x64xf32> to vector<1x16xf32>
    %152 = vector.extract_strided_slice %149 {offsets = [0, 48], sizes = [1, 16], strides = [1, 1]} : vector<1x64xf32> to vector<1x16xf32>
    %153 = vector.extract_strided_slice %144 {offsets = [0, 32], sizes = [1, 16], strides = [1, 1]} : vector<1x64xf32> to vector<1x16xf32>
    %154 = math.tanh %153 : vector<1x16xf32>
    %155 = arith.mulf %151, %120 : vector<1x16xf32>
    %156 = arith.mulf %150, %154 : vector<1x16xf32>
    %157 = arith.addf %155, %156 : vector<1x16xf32>
    %158 = math.tanh %157 : vector<1x16xf32>
    %159 = arith.mulf %152, %158 : vector<1x16xf32>
    %cst_44 = arith.constant dense<0.000000e+00> : vector<1x64xf32>
    %160 = tpu.matmul %159, %2, %cst_44 {dimension_numbers = #tpu.dot_dimension_numbers<[1], [0], [0], [1], [0, 0, 1, 1], [], []>} : vector<1x16xf32>, vector<16x64xf32>, vector<1x64xf32> -> vector<1x64xf32>
    %161 = arith.addf %141, %160 : vector<1x64xf32>
    %162 = arith.negf %161 : vector<1x64xf32>
    %163 = math.exp %162 : vector<1x64xf32>
    %cst_45 = arith.constant 1.000000e+00 : f32
    %164 = vector.broadcast %cst_45 : f32 to vector<1x64xf32>
    %165 = arith.addf %164, %163 : vector<1x64xf32>
    %166 = arith.divf %164, %165 : vector<1x64xf32>
    %167 = vector.extract_strided_slice %166 {offsets = [0, 0], sizes = [1, 16], strides = [1, 1]} : vector<1x64xf32> to vector<1x16xf32>
    %168 = vector.extract_strided_slice %166 {offsets = [0, 16], sizes = [1, 16], strides = [1, 1]} : vector<1x64xf32> to vector<1x16xf32>
    %169 = vector.extract_strided_slice %166 {offsets = [0, 48], sizes = [1, 16], strides = [1, 1]} : vector<1x64xf32> to vector<1x16xf32>
    %170 = vector.extract_strided_slice %161 {offsets = [0, 32], sizes = [1, 16], strides = [1, 1]} : vector<1x64xf32> to vector<1x16xf32>
    %171 = math.tanh %170 : vector<1x16xf32>
    %172 = arith.mulf %168, %137 : vector<1x16xf32>
    %173 = arith.mulf %167, %171 : vector<1x16xf32>
    %174 = arith.addf %172, %173 : vector<1x16xf32>
    %175 = math.tanh %174 : vector<1x16xf32>
    %176 = arith.mulf %169, %175 : vector<1x16xf32>
    %cst_46 = arith.constant dense<0.000000e+00> : vector<1x64xf32>
    %177 = tpu.matmul %176, %3, %cst_46 {dimension_numbers = #tpu.dot_dimension_numbers<[1], [0], [0], [1], [0, 0, 1, 1], [], []>} : vector<1x16xf32>, vector<16x64xf32>, vector<1x64xf32> -> vector<1x64xf32>
    %178 = arith.addf %177, %6 : vector<1x64xf32>
    %179 = vector.extract_strided_slice %27 {offsets = [4, 0], sizes = [1, 64], strides = [1, 1]} : vector<8x64xf32> to vector<1x64xf32>
    %cst_47 = arith.constant dense<0.000000e+00> : vector<1x64xf32>
    %180 = tpu.matmul %159, %1, %cst_47 {dimension_numbers = #tpu.dot_dimension_numbers<[1], [0], [0], [1], [0, 0, 1, 1], [], []>} : vector<1x16xf32>, vector<16x64xf32>, vector<1x64xf32> -> vector<1x64xf32>
    %181 = arith.addf %179, %180 : vector<1x64xf32>
    %182 = arith.negf %181 : vector<1x64xf32>
    %183 = math.exp %182 : vector<1x64xf32>
    %cst_48 = arith.constant 1.000000e+00 : f32
    %184 = vector.broadcast %cst_48 : f32 to vector<1x64xf32>
    %185 = arith.addf %184, %183 : vector<1x64xf32>
    %186 = arith.divf %184, %185 : vector<1x64xf32>
    %187 = vector.extract_strided_slice %186 {offsets = [0, 0], sizes = [1, 16], strides = [1, 1]} : vector<1x64xf32> to vector<1x16xf32>
    %188 = vector.extract_strided_slice %186 {offsets = [0, 16], sizes = [1, 16], strides = [1, 1]} : vector<1x64xf32> to vector<1x16xf32>
    %189 = vector.extract_strided_slice %186 {offsets = [0, 48], sizes = [1, 16], strides = [1, 1]} : vector<1x64xf32> to vector<1x16xf32>
    %190 = vector.extract_strided_slice %181 {offsets = [0, 32], sizes = [1, 16], strides = [1, 1]} : vector<1x64xf32> to vector<1x16xf32>
    %191 = math.tanh %190 : vector<1x16xf32>
    %192 = arith.mulf %188, %157 : vector<1x16xf32>
    %193 = arith.mulf %187, %191 : vector<1x16xf32>
    %194 = arith.addf %192, %193 : vector<1x16xf32>
    %195 = math.tanh %194 : vector<1x16xf32>
    %196 = arith.mulf %189, %195 : vector<1x16xf32>
    %cst_49 = arith.constant dense<0.000000e+00> : vector<1x64xf32>
    %197 = tpu.matmul %196, %2, %cst_49 {dimension_numbers = #tpu.dot_dimension_numbers<[1], [0], [0], [1], [0, 0, 1, 1], [], []>} : vector<1x16xf32>, vector<16x64xf32>, vector<1x64xf32> -> vector<1x64xf32>
    %198 = arith.addf %178, %197 : vector<1x64xf32>
    %199 = arith.negf %198 : vector<1x64xf32>
    %200 = math.exp %199 : vector<1x64xf32>
    %cst_50 = arith.constant 1.000000e+00 : f32
    %201 = vector.broadcast %cst_50 : f32 to vector<1x64xf32>
    %202 = arith.addf %201, %200 : vector<1x64xf32>
    %203 = arith.divf %201, %202 : vector<1x64xf32>
    %204 = vector.extract_strided_slice %203 {offsets = [0, 0], sizes = [1, 16], strides = [1, 1]} : vector<1x64xf32> to vector<1x16xf32>
    %205 = vector.extract_strided_slice %203 {offsets = [0, 16], sizes = [1, 16], strides = [1, 1]} : vector<1x64xf32> to vector<1x16xf32>
    %206 = vector.extract_strided_slice %203 {offsets = [0, 48], sizes = [1, 16], strides = [1, 1]} : vector<1x64xf32> to vector<1x16xf32>
    %207 = vector.extract_strided_slice %198 {offsets = [0, 32], sizes = [1, 16], strides = [1, 1]} : vector<1x64xf32> to vector<1x16xf32>
    %208 = math.tanh %207 : vector<1x16xf32>
    %209 = arith.mulf %205, %174 : vector<1x16xf32>
    %210 = arith.mulf %204, %208 : vector<1x16xf32>
    %211 = arith.addf %209, %210 : vector<1x16xf32>
    %212 = math.tanh %211 : vector<1x16xf32>
    %213 = arith.mulf %206, %212 : vector<1x16xf32>
    %cst_51 = arith.constant dense<0.000000e+00> : vector<1x64xf32>
    %214 = tpu.matmul %213, %3, %cst_51 {dimension_numbers = #tpu.dot_dimension_numbers<[1], [0], [0], [1], [0, 0, 1, 1], [], []>} : vector<1x16xf32>, vector<16x64xf32>, vector<1x64xf32> -> vector<1x64xf32>
    %215 = arith.addf %214, %6 : vector<1x64xf32>
    %216 = vector.extract_strided_slice %27 {offsets = [5, 0], sizes = [1, 64], strides = [1, 1]} : vector<8x64xf32> to vector<1x64xf32>
    %cst_52 = arith.constant dense<0.000000e+00> : vector<1x64xf32>
    %217 = tpu.matmul %196, %1, %cst_52 {dimension_numbers = #tpu.dot_dimension_numbers<[1], [0], [0], [1], [0, 0, 1, 1], [], []>} : vector<1x16xf32>, vector<16x64xf32>, vector<1x64xf32> -> vector<1x64xf32>
    %218 = arith.addf %216, %217 : vector<1x64xf32>
    %219 = arith.negf %218 : vector<1x64xf32>
    %220 = math.exp %219 : vector<1x64xf32>
    %cst_53 = arith.constant 1.000000e+00 : f32
    %221 = vector.broadcast %cst_53 : f32 to vector<1x64xf32>
    %222 = arith.addf %221, %220 : vector<1x64xf32>
    %223 = arith.divf %221, %222 : vector<1x64xf32>
    %224 = vector.extract_strided_slice %223 {offsets = [0, 0], sizes = [1, 16], strides = [1, 1]} : vector<1x64xf32> to vector<1x16xf32>
    %225 = vector.extract_strided_slice %223 {offsets = [0, 16], sizes = [1, 16], strides = [1, 1]} : vector<1x64xf32> to vector<1x16xf32>
    %226 = vector.extract_strided_slice %223 {offsets = [0, 48], sizes = [1, 16], strides = [1, 1]} : vector<1x64xf32> to vector<1x16xf32>
    %227 = vector.extract_strided_slice %218 {offsets = [0, 32], sizes = [1, 16], strides = [1, 1]} : vector<1x64xf32> to vector<1x16xf32>
    %228 = math.tanh %227 : vector<1x16xf32>
    %229 = arith.mulf %225, %194 : vector<1x16xf32>
    %230 = arith.mulf %224, %228 : vector<1x16xf32>
    %231 = arith.addf %229, %230 : vector<1x16xf32>
    %232 = math.tanh %231 : vector<1x16xf32>
    %233 = arith.mulf %226, %232 : vector<1x16xf32>
    %cst_54 = arith.constant dense<0.000000e+00> : vector<1x64xf32>
    %234 = tpu.matmul %233, %2, %cst_54 {dimension_numbers = #tpu.dot_dimension_numbers<[1], [0], [0], [1], [0, 0, 1, 1], [], []>} : vector<1x16xf32>, vector<16x64xf32>, vector<1x64xf32> -> vector<1x64xf32>
    %235 = arith.addf %215, %234 : vector<1x64xf32>
    %236 = arith.negf %235 : vector<1x64xf32>
    %237 = math.exp %236 : vector<1x64xf32>
    %cst_55 = arith.constant 1.000000e+00 : f32
    %238 = vector.broadcast %cst_55 : f32 to vector<1x64xf32>
    %239 = arith.addf %238, %237 : vector<1x64xf32>
    %240 = arith.divf %238, %239 : vector<1x64xf32>
    %241 = vector.extract_strided_slice %240 {offsets = [0, 0], sizes = [1, 16], strides = [1, 1]} : vector<1x64xf32> to vector<1x16xf32>
    %242 = vector.extract_strided_slice %240 {offsets = [0, 16], sizes = [1, 16], strides = [1, 1]} : vector<1x64xf32> to vector<1x16xf32>
    %243 = vector.extract_strided_slice %240 {offsets = [0, 48], sizes = [1, 16], strides = [1, 1]} : vector<1x64xf32> to vector<1x16xf32>
    %244 = vector.extract_strided_slice %235 {offsets = [0, 32], sizes = [1, 16], strides = [1, 1]} : vector<1x64xf32> to vector<1x16xf32>
    %245 = math.tanh %244 : vector<1x16xf32>
    %246 = arith.mulf %242, %211 : vector<1x16xf32>
    %247 = arith.mulf %241, %245 : vector<1x16xf32>
    %248 = arith.addf %246, %247 : vector<1x16xf32>
    %249 = math.tanh %248 : vector<1x16xf32>
    %250 = arith.mulf %243, %249 : vector<1x16xf32>
    %cst_56 = arith.constant dense<0.000000e+00> : vector<1x64xf32>
    %251 = tpu.matmul %250, %3, %cst_56 {dimension_numbers = #tpu.dot_dimension_numbers<[1], [0], [0], [1], [0, 0, 1, 1], [], []>} : vector<1x16xf32>, vector<16x64xf32>, vector<1x64xf32> -> vector<1x64xf32>
    %252 = arith.addf %251, %6 : vector<1x64xf32>
    %253 = vector.extract_strided_slice %27 {offsets = [6, 0], sizes = [1, 64], strides = [1, 1]} : vector<8x64xf32> to vector<1x64xf32>
    %cst_57 = arith.constant dense<0.000000e+00> : vector<1x64xf32>
    %254 = tpu.matmul %233, %1, %cst_57 {dimension_numbers = #tpu.dot_dimension_numbers<[1], [0], [0], [1], [0, 0, 1, 1], [], []>} : vector<1x16xf32>, vector<16x64xf32>, vector<1x64xf32> -> vector<1x64xf32>
    %255 = arith.addf %253, %254 : vector<1x64xf32>
    %256 = arith.negf %255 : vector<1x64xf32>
    %257 = math.exp %256 : vector<1x64xf32>
    %cst_58 = arith.constant 1.000000e+00 : f32
    %258 = vector.broadcast %cst_58 : f32 to vector<1x64xf32>
    %259 = arith.addf %258, %257 : vector<1x64xf32>
    %260 = arith.divf %258, %259 : vector<1x64xf32>
    %261 = vector.extract_strided_slice %260 {offsets = [0, 0], sizes = [1, 16], strides = [1, 1]} : vector<1x64xf32> to vector<1x16xf32>
    %262 = vector.extract_strided_slice %260 {offsets = [0, 16], sizes = [1, 16], strides = [1, 1]} : vector<1x64xf32> to vector<1x16xf32>
    %263 = vector.extract_strided_slice %260 {offsets = [0, 48], sizes = [1, 16], strides = [1, 1]} : vector<1x64xf32> to vector<1x16xf32>
    %264 = vector.extract_strided_slice %255 {offsets = [0, 32], sizes = [1, 16], strides = [1, 1]} : vector<1x64xf32> to vector<1x16xf32>
    %265 = math.tanh %264 : vector<1x16xf32>
    %266 = arith.mulf %262, %231 : vector<1x16xf32>
    %267 = arith.mulf %261, %265 : vector<1x16xf32>
    %268 = arith.addf %266, %267 : vector<1x16xf32>
    %269 = math.tanh %268 : vector<1x16xf32>
    %270 = arith.mulf %263, %269 : vector<1x16xf32>
    %cst_59 = arith.constant dense<0.000000e+00> : vector<1x64xf32>
    %271 = tpu.matmul %270, %2, %cst_59 {dimension_numbers = #tpu.dot_dimension_numbers<[1], [0], [0], [1], [0, 0, 1, 1], [], []>} : vector<1x16xf32>, vector<16x64xf32>, vector<1x64xf32> -> vector<1x64xf32>
    %272 = arith.addf %252, %271 : vector<1x64xf32>
    %273 = arith.negf %272 : vector<1x64xf32>
    %274 = math.exp %273 : vector<1x64xf32>
    %cst_60 = arith.constant 1.000000e+00 : f32
    %275 = vector.broadcast %cst_60 : f32 to vector<1x64xf32>
    %276 = arith.addf %275, %274 : vector<1x64xf32>
    %277 = arith.divf %275, %276 : vector<1x64xf32>
    %278 = vector.extract_strided_slice %277 {offsets = [0, 0], sizes = [1, 16], strides = [1, 1]} : vector<1x64xf32> to vector<1x16xf32>
    %279 = vector.extract_strided_slice %277 {offsets = [0, 16], sizes = [1, 16], strides = [1, 1]} : vector<1x64xf32> to vector<1x16xf32>
    %280 = vector.extract_strided_slice %277 {offsets = [0, 48], sizes = [1, 16], strides = [1, 1]} : vector<1x64xf32> to vector<1x16xf32>
    %281 = vector.extract_strided_slice %272 {offsets = [0, 32], sizes = [1, 16], strides = [1, 1]} : vector<1x64xf32> to vector<1x16xf32>
    %282 = math.tanh %281 : vector<1x16xf32>
    %283 = arith.mulf %279, %248 : vector<1x16xf32>
    %284 = arith.mulf %278, %282 : vector<1x16xf32>
    %285 = arith.addf %283, %284 : vector<1x16xf32>
    %286 = math.tanh %285 : vector<1x16xf32>
    %287 = arith.mulf %280, %286 : vector<1x16xf32>
    %cst_61 = arith.constant dense<0.000000e+00> : vector<1x64xf32>
    %288 = tpu.matmul %287, %3, %cst_61 {dimension_numbers = #tpu.dot_dimension_numbers<[1], [0], [0], [1], [0, 0, 1, 1], [], []>} : vector<1x16xf32>, vector<16x64xf32>, vector<1x64xf32> -> vector<1x64xf32>
    %289 = arith.addf %288, %6 : vector<1x64xf32>
    %290 = vector.extract_strided_slice %27 {offsets = [7, 0], sizes = [1, 64], strides = [1, 1]} : vector<8x64xf32> to vector<1x64xf32>
    %cst_62 = arith.constant dense<0.000000e+00> : vector<1x64xf32>
    %291 = tpu.matmul %270, %1, %cst_62 {dimension_numbers = #tpu.dot_dimension_numbers<[1], [0], [0], [1], [0, 0, 1, 1], [], []>} : vector<1x16xf32>, vector<16x64xf32>, vector<1x64xf32> -> vector<1x64xf32>
    %292 = arith.addf %290, %291 : vector<1x64xf32>
    %293 = arith.negf %292 : vector<1x64xf32>
    %294 = math.exp %293 : vector<1x64xf32>
    %cst_63 = arith.constant 1.000000e+00 : f32
    %295 = vector.broadcast %cst_63 : f32 to vector<1x64xf32>
    %296 = arith.addf %295, %294 : vector<1x64xf32>
    %297 = arith.divf %295, %296 : vector<1x64xf32>
    %298 = vector.extract_strided_slice %297 {offsets = [0, 0], sizes = [1, 16], strides = [1, 1]} : vector<1x64xf32> to vector<1x16xf32>
    %299 = vector.extract_strided_slice %297 {offsets = [0, 16], sizes = [1, 16], strides = [1, 1]} : vector<1x64xf32> to vector<1x16xf32>
    %300 = vector.extract_strided_slice %297 {offsets = [0, 48], sizes = [1, 16], strides = [1, 1]} : vector<1x64xf32> to vector<1x16xf32>
    %301 = vector.extract_strided_slice %292 {offsets = [0, 32], sizes = [1, 16], strides = [1, 1]} : vector<1x64xf32> to vector<1x16xf32>
    %302 = math.tanh %301 : vector<1x16xf32>
    %303 = arith.mulf %299, %268 : vector<1x16xf32>
    %304 = arith.mulf %298, %302 : vector<1x16xf32>
    %305 = arith.addf %303, %304 : vector<1x16xf32>
    %306 = math.tanh %305 : vector<1x16xf32>
    %307 = arith.mulf %300, %306 : vector<1x16xf32>
    %cst_64 = arith.constant dense<0.000000e+00> : vector<1x64xf32>
    %308 = tpu.matmul %307, %2, %cst_64 {dimension_numbers = #tpu.dot_dimension_numbers<[1], [0], [0], [1], [0, 0, 1, 1], [], []>} : vector<1x16xf32>, vector<16x64xf32>, vector<1x64xf32> -> vector<1x64xf32>
    %309 = arith.addf %289, %308 : vector<1x64xf32>
    %310 = arith.negf %309 : vector<1x64xf32>
    %311 = math.exp %310 : vector<1x64xf32>
    %cst_65 = arith.constant 1.000000e+00 : f32
    %312 = vector.broadcast %cst_65 : f32 to vector<1x64xf32>
    %313 = arith.addf %312, %311 : vector<1x64xf32>
    %314 = arith.divf %312, %313 : vector<1x64xf32>
    %315 = vector.extract_strided_slice %314 {offsets = [0, 0], sizes = [1, 16], strides = [1, 1]} : vector<1x64xf32> to vector<1x16xf32>
    %316 = vector.extract_strided_slice %314 {offsets = [0, 16], sizes = [1, 16], strides = [1, 1]} : vector<1x64xf32> to vector<1x16xf32>
    %317 = vector.extract_strided_slice %314 {offsets = [0, 48], sizes = [1, 16], strides = [1, 1]} : vector<1x64xf32> to vector<1x16xf32>
    %318 = vector.extract_strided_slice %309 {offsets = [0, 32], sizes = [1, 16], strides = [1, 1]} : vector<1x64xf32> to vector<1x16xf32>
    %319 = math.tanh %318 : vector<1x16xf32>
    %320 = arith.mulf %316, %285 : vector<1x16xf32>
    %321 = arith.mulf %315, %319 : vector<1x16xf32>
    %322 = arith.addf %320, %321 : vector<1x16xf32>
    %323 = math.tanh %322 : vector<1x16xf32>
    %324 = arith.mulf %317, %323 : vector<1x16xf32>
    %325 = tpu.concatenate %65, %102, %139, %176, %213, %250, %287, %324 in 0 : vector<1x16xf32>, vector<1x16xf32>, vector<1x16xf32>, vector<1x16xf32>, vector<1x16xf32>, vector<1x16xf32>, vector<1x16xf32>, vector<1x16xf32> -> vector<8x16xf32>
    %cst_66 = arith.constant dense<0.000000e+00> : vector<8x128xf32>
    %326 = tpu.matmul %325, %4, %cst_66 {dimension_numbers = #tpu.dot_dimension_numbers<[1], [0], [0], [1], [0, 0, 1, 1], [], []>} : vector<8x16xf32>, vector<16x128xf32>, vector<8x128xf32> -> vector<8x128xf32>
    %327 = vector.broadcast %7 : vector<1x128xf32> to vector<8x128xf32>
    %328 = arith.addf %326, %327 : vector<8x128xf32>
    %329 = vector.extract_strided_slice %328 {offsets = [0, 0], sizes = [8, 3], strides = [1, 1]} : vector<8x128xf32> to vector<8x3xf32>
    %c0_67 = arith.constant 0 : index
    %c0_68 = arith.constant 0 : index
    %330 = vector.load %arg2[%c0_67, %c0_68] : memref<8x3xf32, #tpu.memory_space<vmem>>, vector<8x3xf32>
    tpu.vector_store %arg2[%c0_67, %c0_68], %329 {strides = array<i32>} : memref<8x3xf32, #tpu.memory_space<vmem>>, vector<8x3xf32>,
    return
  }
}

</mosaic_0001>

<bundles_post_ra>
// kernel: net_forward.1
= control target key start
LH: loop header
LB: loop body
LE: loop exit
PB: predicated region body
PF: predicated region fallthrough
CT: control target
= control target key end

     0   :  { %7 = vsyncpa [#allocation3], 0  ;;  %s3052_s9 = smov [#allocation2]   ;;  %s3420_s0 = inlined_call_operand.vmem [shape: f32[8,2,4], index: 0, kind: input, shape index: {}]   ;;  %s3421_s1 = inlined_call_operand.hbm [shape: f32[96,128], index: 1, kind: input, shape index: {}]   ;;  %s3422_s2 = inlined_call_operand.vmem [shape: f32[8,3], index: 2, kind: output, shape index: {}]  }
   0x1   :  { %s15_s10 = sshll.u32 %s3052_s9, 4  ;;  %s3028_s13 = scalar_lea.hbm %s3421_s1, 1536  ;;  %s16_s10 = int_to_ptr.vmem [resolvable:$true] %s15_s10 }
   0x2   :  { %p3029_p0 = scmp.ne.s32.totalorder %s3421_s1, %s3028_s13  ;;  %p3032_p1 = scmp.lt.u32.totalorder %s3028_s13, %s3421_s1 }
   0x4   :  { %p3034_p2 = pnand %p3032_p1, %p3029_p0 }
   0x6   :  { %3037 = shalt.err (!%p3034_p2)
}
   0x7   :  { %s3038_s18 = scalar_lea.vmem %s16_s10, 1536  ;;  %p3043_p4 = scmp.lt.s32.totalorder %s16_s10, %s16_s10 }
   0x8   :  { %p3039_p3 = scmp.ne.s32.totalorder %s16_s10, %s3038_s18  ;;  %p3044_p5 = scmp.lt.s32.totalorder %s3038_s18, %s3038_s18 }
   0xa   :  { %p3045_p6 = por %p3044_p5, %p3043_p4 }
   0xc   :  { %p3046_p7 = pnand %p3045_p6, %p3039_p3 }
   0xe   :  { %3049 = shalt.err (!%p3046_p7)
}
   0xf   :  { %s3053_s19 = smov 128   ;;  %s3054_s20 = smov 8  }
  0x10   :  { %21 = dma.hbm_to_vmem [thread:$0]  %s3421_s1, 1536, %s16_s10, [#allocation3], %s3053_s19, %s3053_s19, %s3054_s20  }
  0x11   :  { %3050 = dma.done.wait [#allocation3], 1536  }
  0x12   :  { %3051 = vsyncadd [#allocation3], 4294965760  ;;  %v3055_v0 = vmov 0.0   ;;  %vm3056_vm0 = vmmov 0   ;;  %v3057_v1 = vmov 0.0|0.0   ;;  %vm73_vm1 = vcmask 1040384  }
  0x13   :  { %2611 = vmatprep.subr.mxu0 %v3055_v0  ;;  %2613 = vmatprep.mubr.msk.f32.mxu0 %vm3056_vm0, %v3055_v0  ;;  %vm79_vm2 = vcmask 1043456   ;;  %v25_v2 = vld [vmem:[#allocation2] sm:$0xf]  ;;  %v2485_v5 = vld [vmem:[%s3420_s0 + $0x5] sm:$0x1]  ;;  %vm75_vm3 = vcmask 1041408  }
  0x14   :  { %2791 = vmatprep.subr.bf16.mxu1 %v3057_v1  ;;  %2620 = vmatprep.mubr.msk.f32.mxu1 %vm3056_vm0, %v3055_v0  ;;  %v37_v3 = vld [vmem:[%s3420_s0 + $0x1] sm:$0x1]  ;;  %v2484_v4 = vld [vmem:[%s3420_s0 + $0x3] sm:$0x1]  ;;  %v2486_v6 = vld [vmem:[%s3420_s0 + $0x7] sm:$0x1] }
  0x15   :  { %v2487_v7 = vld [vmem:[%s3420_s0 + $0x9] sm:$0x1]  ;;  %2612 = vmatpush3.msk.msra.mxu0 %vm79_vm2, %v25_v2  ;;  %v2488_v8 = vld [vmem:[%s3420_s0 + $0xb] sm:$0x1]  ;;  %v53_v9 = vrot.slane %v2484_v4, 7  ;;  %v56_v10 = vrot.slane %v2485_v5, 6 }
  0x16   :  { %v59_v11 = vrot.slane %v2486_v6, 5  ;;  %2794 = vmatprep.subr.bf16.mxu0 %v3057_v1  ;;  %v62_v12 = vrot.slane %v2487_v7, 4  ;;  %vm77_vm4 = vcmask 1042432   ;;  %v2489_v13 = vld [vmem:[%s3420_s0 + $0xd] sm:$0x1]  ;;  %v65_v15 = vrot.slane %v2488_v8, 3 }
  0x17   :  { %v2490_v14 = vld [vmem:[%s3420_s0 + $0xf] sm:$0x1]  ;;  %v74_v16 = vsel %vm73_vm1, %v37_v3, %v53_v9  ;;  %vm81_vm5 = vcmask 1044480   ;;  %v68_v18 = vrot.slane %v2489_v13, 2  ;;  %v27_v20 = vld [vmem:[#allocation2 + $0x10] sm:$0xff]  ;;  %vm83_vm6 = vcmask 1045504  }
  0x18   :  { %v76_v17 = vsel %vm75_vm3, %v74_v16, %v56_v10  ;;  %v26_v19 = vld [vmem:[#allocation2 + $0x8] sm:$0xff]  ;;  %v71_v22 = vrot.slane %v2490_v14, 1  ;;  %vm85_vm7 = vcmask 1046528   ;;  %vm91_vm8 = vcmask 31744   ;;  %s3058_s0 = smov 96   ;;  %s3059_s10 = smov 16  }
  0x19   :  { %v78_v21 = vsel %vm77_vm4, %v76_v17, %v59_v11  ;;  %v3126_v25 = vpack.c.bf16 %v27_v20, %v26_v19  ;;  %v2491_v28 = vld [vmem:[#allocation2 + $0x48] ss:$0 sm:$0xff]  ;;  %v31_v46 = vld [vmem:[#allocation2 + $0x30] sm:$0xff]  ;;  %v28_v47 = vld [vmem:[#allocation2 + $0x18] sm:$0xff]  ;;  %s3060_s11 = smov 32   ;;  %s3061_s12 = smov 80  }
  0x1a   :  { %v80_v23 = vsel %vm79_vm2, %v78_v21, %v62_v12  ;;  %v30_v45 = vld [vmem:[#allocation2 + $0x28] sm:$0xff]  ;;  %v29_v49 = vld [vmem:[#allocation2 + $0x20] sm:$0xff]  ;;  %vm168_vm9 = vcmask 130048   ;;  %v3170_v55 = vld [vmem:[#allocation2 + $0x50] sm:$0x1]  ;;  %vm2477_vm10 = vcmask 23552  }
  0x1b   :  { %v82_v24 = vsel %vm81_vm5, %v80_v23, %v65_v15  ;;  %v3145_v48 = vpack.c.bf16 %v31_v46, %v30_v45  ;;  %v3148_v50 = vpack.c.bf16 %v29_v49, %v28_v47 }
  0x1c   :  { %v84_v26 = vsel %vm83_vm6, %v82_v24, %v68_v18 }
  0x1d   :  { %v86_v27 = vsel %vm85_vm7, %v84_v26, %v71_v22  ;;  %2793 = vmatpush3.bf16.msra.mxu1 %v3145_v48 }
  0x1e   :  { %2614 = vmatmul.mubr.msk.f32.vlgmr.msra.gmra.mrb[0].mxu0 %vm91_vm8, %v86_v27  ;;  %2797 = vmatprep.subr.bf16.mxu1 %v3057_v1 }
  0x1f   :  { %2796 = vmatpush3.bf16.msra.mxu0 %v3126_v25  ;;  %2627 = vmatprep.mubr.msk.f32.mxu0 %vm3056_vm0, %v3055_v0 }
  0x20   :  { %2800 = vmatprep.subr.bf16.mxu0 %v3057_v1  ;;  %2621 = vmatmul.mubr.f32.vlgmr.msra.gmra.mrb[0].mxu1 %v3055_v0 }
  0x21   :  { %2799 = vmatpush3.bf16.msra.mxu1 %v3148_v50  ;;  %2634 = vmatprep.mubr.msk.f32.mxu1 %vm3056_vm0, %v3055_v0 }
  0x22   :  { %2628 = vmatmul.mubr.f32.vlgmr.msra.gmra.mrb[2].mxu0 %v3055_v0  ;;  %2803 = vmatprep.subr.bf16.mxu1 %v3057_v1 }
  0x23   :  { %2641 = vmatprep.mubr.msk.f32.mxu0 %vm3056_vm0, %v3055_v0  ;;  %2802 = vmatpush3.bf16.msra.mxu0 %v3145_v48 }
  0x24   :  { %2806 = vmatprep.subr.bf16.mxu0 %v3057_v1 }
  0xf1   :  { %v164_v29 = vpop.f32.mrb[0].mxu0 }
  0xf2   :  { %v2615_v30 = vpop.f32.mrb[1].mxu0  ;;  %v3137_v31 = vadd.f32 %v2491_v28, %v164_v29 }
  0xf5   :  { %v308_v32 = vpop.f32.mrb[2].mxu0 }
  0xf6   :  { %v312_v33 = vadd.f32 %v308_v32, %v3137_v31  ;;  %v2629_v34 = vpop.f32.mrb[3].mxu0 }
  0xf8   :  { %2900 = vtanh.f32 %v312_v33  ;;  %v2494_v36 = vmul.f32 -1.442695, %v312_v33 }
  0xfa   :  { %2902 = vpow2.f32 %v2494_v36 }
 0x102   :  { %v2901_v35 = vpop.eup %2900 }
 0x103   :  { %322 = vrot.lane.b32.xlu0 %v2901_v35, %s3058_s0 }
 0x104   :  { %v2903_v37 = vpop.eup %2902 }
 0x105   :  { %v316_v38 = vadd.f32 1.0, %v2903_v37 }
 0x107   :  { %2904 = vrcp.f32 %v316_v38 }
 0x111   :  { %v2905_v39 = vpop.eup %2904 }
 0x112   :  { %v320_v42 = vmul.f32 0.0, %v2905_v39 }
 0x175   :  { %v323_v40 = vpop.permute.xlu0 %322 }
 0x176   :  { %v325_v41 = vmul.f32 %v2905_v39, %v323_v40 }
 0x178   :  { %327 = vrot.lane.b32.xlu0 %v325_v41, %s3059_s10 }
 0x1ea   :  { %v328_v43 = vpop.permute.xlu0 %327 }
 0x1eb   :  { %v3142_v44 = vadd.f32 %v328_v43, %v320_v42 }
 0x1ed   :  { %2906 = vtanh.f32 %v3142_v44  ;;  %v594_v18 = vrot.slane %v3142_v44, 7 }
 0x1f7   :  { %v2907_v51 = vpop.eup %2906 }
 0x1f8   :  { %333 = vrot.lane.b32.xlu1 %v2907_v51, %s3060_s11 }
 0x26a   :  { %v334_v52 = vpop.permute.xlu1 %333 }
 0x26b   :  { %v336_v53 = vmul.f32 %v2905_v39, %v334_v52 }
 0x26d   :  { %338 = vrot.lane.b32.xlu1 %v336_v53, %s3061_s12 }
 0x2df   :  { %v339_v54 = vpop.permute.xlu1 %338 }
 0x2e0   :  { %2635 = vmatmul.mubr.msk.f32.vlgmr.msra.gmra.mrb[0].mxu1 %vm168_vm9, %v339_v54 }
 0x2e1   :  { %2805 = vmatpush3.bf16.msra.mxu1 %v3126_v25  ;;  %2648 = vmatprep.mubr.msk.f32.mxu1 %vm3056_vm0, %v3055_v0 }
 0x2e2   :  { %2809 = vmatprep.subr.bf16.mxu1 %v3057_v1 }
 0x2e4   :  { %2649 = vmatmul.mubr.msk.f32.vlgmr.msra.gmra.mrb[2].mxu1 %vm168_vm9, %v339_v54 }
 0x2e5   :  { %2811 = vmatpush3.bf16.msra.mxu1 %v3145_v48  ;;  %2662 = vmatprep.mubr.msk.f32.mxu1 %vm3056_vm0, %v3055_v0 }
 0x2e6   :  { %2815 = vmatprep.subr.bf16.mxu1 %v3057_v1 }
 0x3b3   :  { %v408_v56 = vpop.f32.mrb[0].mxu1 }
 0x3b4   :  { %v2866_v57 = vadd.f32 %v408_v56, %v3170_v55  ;;  %v2636_v58 = vpop.f32.mrb[1].mxu1 }
 0x3b6   :  { %2908 = vtanh.f32 %v2866_v57  ;;  %v2496_v3 = vmul.f32 -1.442695, %v2866_v57 }
 0x3b7   :  { %v578_v59 = vpop.f32.mrb[2].mxu1 }
 0x3b8   :  { %v583_v60 = vrot.slane %v578_v59, 7  ;;  %v2650_v61 = vpop.f32.mrb[3].mxu1 }
 0x3ba   :  { %v585_v62 = vadd.f32 %v583_v60, %v3137_v31 }
 0x3bc   :  { %2910 = vtanh.f32 %v585_v62  ;;  %v2499_v4 = vmul.f32 -1.442695, %v585_v62 }
 0x3bd   :  { %2912 = vpow2.f32 %v2496_v3 }
 0x3be   :  { %2914 = vpow2.f32 %v2499_v4 }
 0x3c0   :  { %v2909_v63 = vpop.eup %2908 }
 0x3c1   :  { %422 = vrot.lane.b32.xlu0 %v2909_v63, %s3058_s0 }
 0x3c6   :  { %v2911_v2 = vpop.eup %2910 }
 0x3c7   :  { %598 = vrot.lane.b32.xlu1 %v2911_v2, %s3058_s0  ;;  %v2913_v5 = vpop.eup %2912 }
 0x3c8   :  { %v416_v6 = vadd.f32 1.0, %v2913_v5  ;;  %v2915_v7 = vpop.eup %2914 }
 0x3c9   :  { %v589_v8 = vadd.f32 1.0, %v2915_v7 }
 0x3ca   :  { %2916 = vrcp.f32 %v416_v6 }
 0x3cb   :  { %2918 = vrcp.f32 %v589_v8 }
 0x3d4   :  { %v2917_v9 = vpop.eup %2916 }
 0x3d5   :  { %v2919_v12 = vpop.eup %2918  ;;  %v420_v15 = vmul.f32 0.0, %v2917_v9 }
 0x3d6   :  { %v596_v19 = vmul.f32 %v2919_v12, %v594_v18 }
 0x433   :  { %v423_v10 = vpop.permute.xlu0 %422 }
 0x434   :  { %v425_v11 = vmul.f32 %v2917_v9, %v423_v10 }
 0x436   :  { %427 = vrot.lane.b32.xlu0 %v425_v11, %s3059_s10 }
 0x439   :  { %v599_v13 = vpop.permute.xlu1 %598 }
 0x43a   :  { %v601_v14 = vmul.f32 %v2919_v12, %v599_v13 }
 0x43c   :  { %603 = vrot.lane.b32.xlu1 %v601_v14, %s3059_s10 }
 0x4a8   :  { %v428_v16 = vpop.permute.xlu0 %427 }
 0x4a9   :  { %v3178_v17 = vadd.f32 %v428_v16, %v420_v15 }
 0x4ab   :  { %2920 = vtanh.f32 %v3178_v17 }
 0x4ae   :  { %v604_v20 = vpop.permute.xlu1 %603 }
 0x4af   :  { %v3182_v21 = vadd.f32 %v604_v20, %v596_v19 }
 0x4b1   :  { %2922 = vtanh.f32 %v3182_v21  ;;  %v871_v60 = vrot.slane %v3182_v21, 7 }
 0x4b5   :  { %v2921_v22 = vpop.eup %2920 }
 0x4b6   :  { %433 = vrot.lane.b32.xlu0 %v2921_v22, %s3060_s11 }
 0x4bb   :  { %v2923_v23 = vpop.eup %2922 }
 0x4bc   :  { %609 = vrot.lane.b32.xlu1 %v2923_v23, %s3060_s11 }
 0x528   :  { %v434_v24 = vpop.permute.xlu0 %433 }
 0x529   :  { %v3187_v26 = vmul.f32 %v2917_v9, %v434_v24 }
 0x52b   :  { %438 = vrot.lane.b32.xlu0 %v3187_v26, %s3061_s12 }
 0x52e   :  { %v610_v27 = vpop.permute.xlu1 %609 }
 0x52f   :  { %v612_v28 = vmul.f32 %v2919_v12, %v610_v27 }
 0x531   :  { %v614_v29 = vrot.slane %v612_v28, 1 }
 0x533   :  { %615 = vrot.lane.b32.xlu1 %v614_v29, %s3061_s12 }
 0x59d   :  { %v439_v30 = vpop.permute.xlu0 %438 }
 0x59e   :  { %2642 = vmatmul.mubr.msk.f32.vlgmr.msra.gmra.mrb[4].mxu0 %vm168_vm9, %v439_v30 }
 0x59f   :  { %2808 = vmatpush3.bf16.msra.mxu0 %v3148_v50  ;;  %2655 = vmatprep.mubr.msk.f32.mxu0 %vm3056_vm0, %v3055_v0 }
 0x5a0   :  { %2812 = vmatprep.subr.bf16.mxu0 %v3057_v1 }
 0x5a5   :  { %v616_v32 = vpop.permute.xlu1 %615 }
 0x5a6   :  { %2656 = vmatmul.mubr.msk.f32.vlgmr.msra.gmra.mrb[4].mxu0 %vm168_vm9, %v616_v32 }
 0x5a7   :  { %2814 = vmatpush3.bf16.msra.mxu0 %v3126_v25  ;;  %2669 = vmatprep.mubr.msk.f32.mxu0 %vm3056_vm0, %v3055_v0 }
 0x5a8   :  { %2818 = vmatprep.subr.bf16.mxu0 %v3057_v1 }
 0x5aa   :  { %2670 = vmatmul.mubr.msk.f32.vlgmr.msra.gmra.mrb[6].mxu0 %vm168_vm9, %v616_v32 }
 0x5ab   :  { %2820 = vmatpush3.bf16.msra.mxu0 %v3145_v48  ;;  %2683 = vmatprep.mubr.msk.f32.mxu0 %vm3056_vm0, %v3055_v0 }
 0x5ac   :  { %2824 = vmatprep.subr.bf16.mxu0 %v3057_v1 }
 0x679   :  { %v685_v33 = vpop.f32.mrb[4].mxu0 }
 0x67a   :  { %v2867_v34 = vadd.f32 %v685_v33, %v3170_v55  ;;  %v2657_v35 = vpop.f32.mrb[5].mxu0 }
 0x67c   :  { %2924 = vtanh.f32 %v2867_v34  ;;  %v2501_v42 = vmul.f32 -1.442695, %v2867_v34 }
 0x67d   :  { %v855_v36 = vpop.f32.mrb[6].mxu0 }
 0x67e   :  { %v860_v37 = vrot.slane %v855_v36, 6  ;;  %v2671_v38 = vpop.f32.mrb[7].mxu0 }
 0x680   :  { %v862_v39 = vadd.f32 %v860_v37, %v3137_v31 }
 0x682   :  { %2926 = vtanh.f32 %v862_v39  ;;  %v2504_v43 = vmul.f32 -1.442695, %v862_v39 }
 0x683   :  { %2928 = vpow2.f32 %v2501_v42 }
 0x684   :  { %2930 = vpow2.f32 %v2504_v43 }
 0x686   :  { %v2925_v40 = vpop.eup %2924 }
 0x687   :  { %699 = vrot.lane.b32.xlu0 %v2925_v40, %s3058_s0 }
 0x68c   :  { %v2927_v41 = vpop.eup %2926 }
 0x68d   :  { %875 = vrot.lane.b32.xlu1 %v2927_v41, %s3058_s0  ;;  %v2929_v44 = vpop.eup %2928 }
 0x68e   :  { %v693_v45 = vadd.f32 1.0, %v2929_v44  ;;  %v2931_v46 = vpop.eup %2930 }
 0x68f   :  { %v866_v47 = vadd.f32 1.0, %v2931_v46 }
 0x690   :  { %2932 = vrcp.f32 %v693_v45 }
 0x691   :  { %2934 = vrcp.f32 %v866_v47 }
 0x69a   :  { %v2933_v49 = vpop.eup %2932 }
 0x69b   :  { %v2935_v53 = vpop.eup %2934  ;;  %v697_v57 = vmul.f32 %v2933_v49, %v3178_v17 }
 0x69c   :  { %v873_v61 = vmul.f32 %v2935_v53, %v871_v60 }
 0x6f9   :  { %v700_v51 = vpop.permute.xlu0 %699 }
 0x6fa   :  { %v702_v52 = vmul.f32 %v2933_v49, %v700_v51 }
 0x6fc   :  { %704 = vrot.lane.b32.xlu0 %v702_v52, %s3059_s10 }
 0x6ff   :  { %v876_v54 = vpop.permute.xlu1 %875 }
 0x700   :  { %v878_v56 = vmul.f32 %v2935_v53, %v876_v54 }
 0x702   :  { %880 = vrot.lane.b32.xlu1 %v878_v56, %s3059_s10 }
 0x76e   :  { %v705_v58 = vpop.permute.xlu0 %704 }
 0x76f   :  { %v3214_v59 = vadd.f32 %v705_v58, %v697_v57 }
 0x771   :  { %2936 = vtanh.f32 %v3214_v59 }
 0x774   :  { %v881_v62 = vpop.permute.xlu1 %880 }
 0x775   :  { %v3218_v63 = vadd.f32 %v881_v62, %v873_v61 }
 0x777   :  { %2938 = vtanh.f32 %v3218_v63  ;;  %v1148_v38 = vrot.slane %v3218_v63, 7 }
 0x77b   :  { %v2937_v2 = vpop.eup %2936 }
 0x77c   :  { %710 = vrot.lane.b32.xlu0 %v2937_v2, %s3060_s11 }
 0x781   :  { %v2939_v3 = vpop.eup %2938 }
 0x782   :  { %886 = vrot.lane.b32.xlu1 %v2939_v3, %s3060_s11 }
 0x7ee   :  { %v711_v4 = vpop.permute.xlu0 %710 }
 0x7ef   :  { %v3223_v5 = vmul.f32 %v2933_v49, %v711_v4 }
 0x7f1   :  { %715 = vrot.lane.b32.xlu0 %v3223_v5, %s3061_s12  ;;  %v2376_v44 = vrot.slane %v3223_v5, 7 }
 0x7f3   :  { %v2391_v49 = vsel %vm73_vm1, %v3187_v26, %v2376_v44 }
 0x7f4   :  { %v887_v6 = vpop.permute.xlu1 %886 }
 0x7f5   :  { %v889_v7 = vmul.f32 %v2935_v53, %v887_v6 }
 0x7f7   :  { %v891_v8 = vrot.slane %v889_v7, 2 }
 0x7f9   :  { %892 = vrot.lane.b32.xlu1 %v891_v8, %s3061_s12 }
 0x863   :  { %v716_v9 = vpop.permute.xlu0 %715 }
 0x864   :  { %2663 = vmatmul.mubr.msk.f32.vlgmr.msra.gmra.mrb[4].mxu1 %vm168_vm9, %v716_v9 }
 0x865   :  { %2817 = vmatpush3.bf16.msra.mxu1 %v3148_v50  ;;  %2676 = vmatprep.mubr.msk.f32.mxu1 %vm3056_vm0, %v3055_v0 }
 0x866   :  { %2821 = vmatprep.subr.bf16.mxu1 %v3057_v1 }
 0x86b   :  { %v893_v10 = vpop.permute.xlu1 %892 }
 0x86c   :  { %2677 = vmatmul.mubr.msk.f32.vlgmr.msra.gmra.mrb[4].mxu1 %vm168_vm9, %v893_v10 }
 0x86d   :  { %2823 = vmatpush3.bf16.msra.mxu1 %v3126_v25  ;;  %2690 = vmatprep.mubr.msk.f32.mxu1 %vm3056_vm0, %v3055_v0 }
 0x86e   :  { %2827 = vmatprep.subr.bf16.mxu1 %v3057_v1 }
 0x870   :  { %2691 = vmatmul.mubr.msk.f32.vlgmr.msra.gmra.mrb[6].mxu1 %vm168_vm9, %v893_v10 }
 0x871   :  { %2829 = vmatpush3.bf16.msra.mxu1 %v3145_v48  ;;  %2704 = vmatprep.mubr.msk.f32.mxu1 %vm3056_vm0, %v3055_v0 }
 0x872   :  { %2833 = vmatprep.subr.bf16.mxu1 %v3057_v1 }
 0x93f   :  { %v962_v11 = vpop.f32.mrb[4].mxu1 }
 0x940   :  { %v2868_v12 = vadd.f32 %v962_v11, %v3170_v55  ;;  %v2678_v13 = vpop.f32.mrb[5].mxu1 }
 0x942   :  { %2940 = vtanh.f32 %v2868_v12  ;;  %v2506_v20 = vmul.f32 -1.442695, %v2868_v12 }
 0x943   :  { %v1132_v14 = vpop.f32.mrb[6].mxu1 }
 0x944   :  { %v1137_v15 = vrot.slane %v1132_v14, 5  ;;  %v2692_v16 = vpop.f32.mrb[7].mxu1 }
 0x946   :  { %v1139_v17 = vadd.f32 %v1137_v15, %v3137_v31 }
 0x948   :  { %2942 = vtanh.f32 %v1139_v17  ;;  %v2509_v21 = vmul.f32 -1.442695, %v1139_v17 }
 0x949   :  { %2944 = vpow2.f32 %v2506_v20 }
 0x94a   :  { %2946 = vpow2.f32 %v2509_v21 }
 0x94c   :  { %v2941_v18 = vpop.eup %2940 }
 0x94d   :  { %976 = vrot.lane.b32.xlu0 %v2941_v18, %s3058_s0 }
 0x952   :  { %v2943_v19 = vpop.eup %2942 }
 0x953   :  { %1152 = vrot.lane.b32.xlu1 %v2943_v19, %s3058_s0  ;;  %v2945_v22 = vpop.eup %2944 }
 0x954   :  { %v970_v23 = vadd.f32 1.0, %v2945_v22  ;;  %v2947_v24 = vpop.eup %2946 }
 0x955   :  { %v1143_v27 = vadd.f32 1.0, %v2947_v24 }
 0x956   :  { %2948 = vrcp.f32 %v970_v23 }
 0x957   :  { %2950 = vrcp.f32 %v1143_v27 }
 0x960   :  { %v2949_v28 = vpop.eup %2948 }
 0x961   :  { %v2951_v32 = vpop.eup %2950  ;;  %v974_v35 = vmul.f32 %v2949_v28, %v3214_v59 }
 0x962   :  { %v1150_v39 = vmul.f32 %v2951_v32, %v1148_v38 }
 0x9bf   :  { %v977_v29 = vpop.permute.xlu0 %976 }
 0x9c0   :  { %v979_v30 = vmul.f32 %v2949_v28, %v977_v29 }
 0x9c2   :  { %981 = vrot.lane.b32.xlu0 %v979_v30, %s3059_s10 }
 0x9c5   :  { %v1153_v33 = vpop.permute.xlu1 %1152 }
 0x9c6   :  { %v1155_v34 = vmul.f32 %v2951_v32, %v1153_v33 }
 0x9c8   :  { %1157 = vrot.lane.b32.xlu1 %v1155_v34, %s3059_s10 }
 0xa34   :  { %v982_v36 = vpop.permute.xlu0 %981 }
 0xa35   :  { %v3250_v37 = vadd.f32 %v982_v36, %v974_v35 }
 0xa37   :  { %2952 = vtanh.f32 %v3250_v37 }
 0xa3a   :  { %v1158_v40 = vpop.permute.xlu1 %1157 }
 0xa3b   :  { %v3254_v41 = vadd.f32 %v1158_v40, %v1150_v39 }
 0xa3d   :  { %2954 = vtanh.f32 %v3254_v41  ;;  %v1425_v19 = vrot.slane %v3254_v41, 7 }
 0xa41   :  { %v2953_v42 = vpop.eup %2952 }
 0xa42   :  { %987 = vrot.lane.b32.xlu0 %v2953_v42, %s3060_s11 }
 0xa47   :  { %v2955_v43 = vpop.eup %2954 }
 0xa48   :  { %1163 = vrot.lane.b32.xlu1 %v2955_v43, %s3060_s11 }
 0xab4   :  { %v988_v45 = vpop.permute.xlu0 %987 }
 0xab5   :  { %v990_v46 = vmul.f32 %v2949_v28, %v988_v45 }
 0xab7   :  { %v2378_v47 = vrot.slane %v990_v46, 6  ;;  %992 = vrot.lane.b32.xlu0 %v990_v46, %s3061_s12 }
 0xab9   :  { %v3264_v51 = vsel %vm75_vm3, %v2391_v49, %v2378_v47 }
 0xaba   :  { %v1164_v52 = vpop.permute.xlu1 %1163 }
 0xabb   :  { %v1166_v53 = vmul.f32 %v2951_v32, %v1164_v52 }
 0xabd   :  { %v1168_v54 = vrot.slane %v1166_v53, 3 }
 0xabf   :  { %1169 = vrot.lane.b32.xlu1 %v1168_v54, %s3061_s12 }
 0xb29   :  { %v993_v56 = vpop.permute.xlu0 %992 }
 0xb2a   :  { %2684 = vmatmul.mubr.msk.f32.vlgmr.msra.gmra.mrb[8].mxu0 %vm168_vm9, %v993_v56 }
 0xb2b   :  { %2826 = vmatpush3.bf16.msra.mxu0 %v3148_v50  ;;  %2697 = vmatprep.mubr.msk.f32.mxu0 %vm3056_vm0, %v3055_v0 }
 0xb2c   :  { %2830 = vmatprep.subr.bf16.mxu0 %v3057_v1 }
 0xb31   :  { %v1170_v57 = vpop.permute.xlu1 %1169 }
 0xb32   :  { %2698 = vmatmul.mubr.msk.f32.vlgmr.msra.gmra.mrb[8].mxu0 %vm168_vm9, %v1170_v57 }
 0xb33   :  { %2832 = vmatpush3.bf16.msra.mxu0 %v3126_v25  ;;  %2711 = vmatprep.mubr.msk.f32.mxu0 %vm3056_vm0, %v3055_v0 }
 0xb34   :  { %2836 = vmatprep.subr.bf16.mxu0 %v3057_v1 }
 0xb36   :  { %2712 = vmatmul.mubr.msk.f32.vlgmr.msra.gmra.mrb[10].mxu0 %vm168_vm9, %v1170_v57 }
 0xb37   :  { %2838 = vmatpush3.bf16.msra.mxu0 %v3145_v48  ;;  %2725 = vmatprep.mubr.msk.f32.mxu0 %vm3056_vm0, %v3055_v0 }
 0xb38   :  { %2842 = vmatprep.subr.bf16.mxu0 %v3057_v1 }
 0xc05   :  { %v1239_v26 = vpop.f32.mrb[8].mxu0 }
 0xc06   :  { %v2869_v58 = vadd.f32 %v1239_v26, %v3170_v55  ;;  %v2699_v59 = vpop.f32.mrb[9].mxu0 }
 0xc08   :  { %2956 = vtanh.f32 %v2869_v58  ;;  %v2511_v4 = vmul.f32 -1.442695, %v2869_v58 }
 0xc09   :  { %v1409_v60 = vpop.f32.mrb[10].mxu0 }
 0xc0a   :  { %v1414_v61 = vrot.slane %v1409_v60, 4  ;;  %v2713_v62 = vpop.f32.mrb[11].mxu0 }
 0xc0c   :  { %v1416_v63 = vadd.f32 %v1414_v61, %v3137_v31 }
 0xc0e   :  { %2958 = vtanh.f32 %v1416_v63  ;;  %v2514_v5 = vmul.f32 -1.442695, %v1416_v63 }
 0xc0f   :  { %2960 = vpow2.f32 %v2511_v4 }
 0xc10   :  { %2962 = vpow2.f32 %v2514_v5 }
 0xc12   :  { %v2957_v2 = vpop.eup %2956 }
 0xc13   :  { %1253 = vrot.lane.b32.xlu0 %v2957_v2, %s3058_s0 }
 0xc18   :  { %v2959_v3 = vpop.eup %2958 }
 0xc19   :  { %1429 = vrot.lane.b32.xlu1 %v2959_v3, %s3058_s0  ;;  %v2961_v6 = vpop.eup %2960 }
 0xc1a   :  { %v1247_v7 = vadd.f32 1.0, %v2961_v6  ;;  %v2963_v8 = vpop.eup %2962 }
 0xc1b   :  { %v1420_v9 = vadd.f32 1.0, %v2963_v8 }
 0xc1c   :  { %2964 = vrcp.f32 %v1247_v7 }
 0xc1d   :  { %2966 = vrcp.f32 %v1420_v9 }
 0xc26   :  { %v2965_v10 = vpop.eup %2964 }
 0xc27   :  { %v2967_v13 = vpop.eup %2966  ;;  %v1251_v16 = vmul.f32 %v2965_v10, %v3250_v37 }
 0xc28   :  { %v1427_v20 = vmul.f32 %v2967_v13, %v1425_v19 }
 0xc85   :  { %v1254_v11 = vpop.permute.xlu0 %1253 }
 0xc86   :  { %v1256_v12 = vmul.f32 %v2965_v10, %v1254_v11 }
 0xc88   :  { %1258 = vrot.lane.b32.xlu0 %v1256_v12, %s3059_s10 }
 0xc8b   :  { %v1430_v14 = vpop.permute.xlu1 %1429 }
 0xc8c   :  { %v1432_v15 = vmul.f32 %v2967_v13, %v1430_v14 }
 0xc8e   :  { %1434 = vrot.lane.b32.xlu1 %v1432_v15, %s3059_s10 }
 0xcfa   :  { %v1259_v17 = vpop.permute.xlu0 %1258 }
 0xcfb   :  { %v3289_v18 = vadd.f32 %v1259_v17, %v1251_v16 }
 0xcfd   :  { %2968 = vtanh.f32 %v3289_v18 }
 0xd00   :  { %v1435_v21 = vpop.permute.xlu1 %1434 }
 0xd01   :  { %v3293_v22 = vadd.f32 %v1435_v21, %v1427_v20 }
 0xd03   :  { %2970 = vtanh.f32 %v3293_v22  ;;  %v1702_v63 = vrot.slane %v3293_v22, 7 }
 0xd07   :  { %v2969_v23 = vpop.eup %2968 }
 0xd08   :  { %1264 = vrot.lane.b32.xlu0 %v2969_v23, %s3060_s11 }
 0xd0d   :  { %v2971_v24 = vpop.eup %2970 }
 0xd0e   :  { %1440 = vrot.lane.b32.xlu1 %v2971_v24, %s3060_s11 }
 0xd7a   :  { %v1265_v27 = vpop.permute.xlu0 %1264 }
 0xd7b   :  { %v1267_v28 = vmul.f32 %v2965_v10, %v1265_v27 }
 0xd7d   :  { %v2380_v29 = vrot.slane %v1267_v28, 5  ;;  %1269 = vrot.lane.b32.xlu0 %v1267_v28, %s3061_s12 }
 0xd7f   :  { %v3301_v30 = vsel %vm77_vm4, %v3264_v51, %v2380_v29 }
 0xd80   :  { %v1441_v32 = vpop.permute.xlu1 %1440 }
 0xd81   :  { %v1443_v33 = vmul.f32 %v2967_v13, %v1441_v32 }
 0xd83   :  { %v1445_v34 = vrot.slane %v1443_v33, 4 }
 0xd85   :  { %1446 = vrot.lane.b32.xlu1 %v1445_v34, %s3061_s12 }
 0xdef   :  { %v1270_v35 = vpop.permute.xlu0 %1269 }
 0xdf0   :  { %2705 = vmatmul.mubr.msk.f32.vlgmr.msra.gmra.mrb[8].mxu1 %vm168_vm9, %v1270_v35 }
 0xdf1   :  { %2835 = vmatpush3.bf16.msra.mxu1 %v3148_v50  ;;  %2718 = vmatprep.mubr.msk.f32.mxu1 %vm3056_vm0, %v3055_v0 }
 0xdf2   :  { %2839 = vmatprep.subr.bf16.mxu1 %v3057_v1 }
 0xdf7   :  { %v1447_v36 = vpop.permute.xlu1 %1446 }
 0xdf8   :  { %2719 = vmatmul.mubr.msk.f32.vlgmr.msra.gmra.mrb[8].mxu1 %vm168_vm9, %v1447_v36 }
 0xdf9   :  { %2841 = vmatpush3.bf16.msra.mxu1 %v3126_v25  ;;  %2732 = vmatprep.mubr.msk.f32.mxu1 %vm3056_vm0, %v3055_v0 }
 0xdfa   :  { %2845 = vmatprep.subr.bf16.mxu1 %v3057_v1 }
 0xdfc   :  { %2733 = vmatmul.mubr.msk.f32.vlgmr.msra.gmra.mrb[10].mxu1 %vm168_vm9, %v1447_v36 }
 0xdfd   :  { %2847 = vmatpush3.bf16.msra.mxu1 %v3145_v48  ;;  %2746 = vmatprep.mubr.msk.f32.mxu1 %vm3056_vm0, %v3055_v0 }
 0xdfe   :  { %2851 = vmatprep.subr.bf16.mxu1 %v3057_v1 }
 0xecb   :  { %v1516_v37 = vpop.f32.mrb[8].mxu1 }
 0xecc   :  { %v2870_v38 = vadd.f32 %v1516_v37, %v3170_v55  ;;  %v2720_v39 = vpop.f32.mrb[9].mxu1 }
 0xece   :  { %2972 = vtanh.f32 %v2870_v38  ;;  %v2516_v46 = vmul.f32 -1.442695, %v2870_v38 }
 0xecf   :  { %v1686_v40 = vpop.f32.mrb[10].mxu1 }
 0xed0   :  { %v1691_v41 = vrot.slane %v1686_v40, 3  ;;  %v2734_v42 = vpop.f32.mrb[11].mxu1 }
 0xed2   :  { %v1693_v43 = vadd.f32 %v1691_v41, %v3137_v31 }
 0xed4   :  { %2974 = vtanh.f32 %v1693_v43  ;;  %v2519_v47 = vmul.f32 -1.442695, %v1693_v43 }
 0xed5   :  { %2976 = vpow2.f32 %v2516_v46 }
 0xed6   :  { %2978 = vpow2.f32 %v2519_v47 }
 0xed8   :  { %v2973_v44 = vpop.eup %2972 }
 0xed9   :  { %1530 = vrot.lane.b32.xlu0 %v2973_v44, %s3058_s0 }
 0xede   :  { %v2975_v45 = vpop.eup %2974 }
 0xedf   :  { %1706 = vrot.lane.b32.xlu1 %v2975_v45, %s3058_s0  ;;  %v2977_v49 = vpop.eup %2976 }
 0xee0   :  { %v1524_v51 = vadd.f32 1.0, %v2977_v49  ;;  %v2979_v52 = vpop.eup %2978 }
 0xee1   :  { %v1697_v53 = vadd.f32 1.0, %v2979_v52 }
 0xee2   :  { %2980 = vrcp.f32 %v1524_v51 }
 0xee3   :  { %2982 = vrcp.f32 %v1697_v53 }
 0xeec   :  { %v2981_v54 = vpop.eup %2980 }
 0xeed   :  { %v2983_v26 = vpop.eup %2982  ;;  %v1528_v60 = vmul.f32 %v2981_v54, %v3289_v18 }
 0xeee   :  { %v1704_v2 = vmul.f32 %v2983_v26, %v1702_v63 }
 0xf4b   :  { %v1531_v56 = vpop.permute.xlu0 %1530 }
 0xf4c   :  { %v1533_v57 = vmul.f32 %v2981_v54, %v1531_v56 }
 0xf4e   :  { %1535 = vrot.lane.b32.xlu0 %v1533_v57, %s3059_s10 }
 0xf51   :  { %v1707_v58 = vpop.permute.xlu1 %1706 }
 0xf52   :  { %v1709_v59 = vmul.f32 %v2983_v26, %v1707_v58 }
 0xf54   :  { %1711 = vrot.lane.b32.xlu1 %v1709_v59, %s3059_s10 }
 0xfc0   :  { %v1536_v61 = vpop.permute.xlu0 %1535 }
 0xfc1   :  { %v3326_v62 = vadd.f32 %v1536_v61, %v1528_v60 }
 0xfc3   :  { %2984 = vtanh.f32 %v3326_v62 }
 0xfc6   :  { %v1712_v3 = vpop.permute.xlu1 %1711 }
 0xfc7   :  { %v3330_v4 = vadd.f32 %v1712_v3, %v1704_v2 }
 0xfc9   :  { %2986 = vtanh.f32 %v3330_v4  ;;  %v1979_v42 = vrot.slane %v3330_v4, 7 }
 0xfcd   :  { %v2985_v5 = vpop.eup %2984 }
 0xfce   :  { %1541 = vrot.lane.b32.xlu0 %v2985_v5, %s3060_s11 }
 0xfd3   :  { %v2987_v6 = vpop.eup %2986 }
 0xfd4   :  { %1717 = vrot.lane.b32.xlu1 %v2987_v6, %s3060_s11 }
0x1040   :  { %v1542_v7 = vpop.permute.xlu0 %1541 }
0x1041   :  { %v1544_v8 = vmul.f32 %v2981_v54, %v1542_v7 }
0x1043   :  { %v2382_v9 = vrot.slane %v1544_v8, 4  ;;  %1546 = vrot.lane.b32.xlu0 %v1544_v8, %s3061_s12 }
0x1045   :  { %v3338_v10 = vsel %vm79_vm2, %v3301_v30, %v2382_v9 }
0x1046   :  { %v1718_v11 = vpop.permute.xlu1 %1717 }
0x1047   :  { %v1720_v12 = vmul.f32 %v2983_v26, %v1718_v11 }
0x1049   :  { %v1722_v13 = vrot.slane %v1720_v12, 5 }
0x104b   :  { %1723 = vrot.lane.b32.xlu1 %v1722_v13, %s3061_s12 }
0x10b5   :  { %v1547_v14 = vpop.permute.xlu0 %1546 }
0x10b6   :  { %2726 = vmatmul.mubr.msk.f32.vlgmr.msra.gmra.mrb[12].mxu0 %vm168_vm9, %v1547_v14 }
0x10b7   :  { %2844 = vmatpush3.bf16.msra.mxu0 %v3148_v50  ;;  %2739 = vmatprep.mubr.msk.f32.mxu0 %vm3056_vm0, %v3055_v0 }
0x10b8   :  { %2848 = vmatprep.subr.bf16.mxu0 %v3057_v1 }
0x10bd   :  { %v1724_v15 = vpop.permute.xlu1 %1723 }
0x10be   :  { %2740 = vmatmul.mubr.msk.f32.vlgmr.msra.gmra.mrb[12].mxu0 %vm168_vm9, %v1724_v15 }
0x10bf   :  { %2850 = vmatpush3.bf16.msra.mxu0 %v3126_v25  ;;  %2753 = vmatprep.mubr.msk.f32.mxu0 %vm3056_vm0, %v3055_v0 }
0x10c0   :  { %2854 = vmatprep.subr.bf16.mxu0 %v3057_v1 }
0x10c2   :  { %2754 = vmatmul.mubr.msk.f32.vlgmr.msra.gmra.mrb[14].mxu0 %vm168_vm9, %v1724_v15 }
0x10c3   :  { %2856 = vmatpush3.bf16.msra.mxu0 %v3145_v48  ;;  %2767 = vmatprep.mubr.msk.f32.mxu0 %vm3056_vm0, %v3055_v0 }
0x10c4   :  { %2860 = vmatprep.subr.bf16.mxu0 %v3057_v1 }
0x1191   :  { %v1793_v16 = vpop.f32.mrb[12].mxu0 }
0x1192   :  { %v2871_v17 = vadd.f32 %v1793_v16, %v3170_v55  ;;  %v2741_v18 = vpop.f32.mrb[13].mxu0 }
0x1194   :  { %2988 = vtanh.f32 %v2871_v17  ;;  %v2521_v24 = vmul.f32 -1.442695, %v2871_v17 }
0x1195   :  { %v1963_v19 = vpop.f32.mrb[14].mxu0 }
0x1196   :  { %v1968_v20 = vrot.slane %v1963_v19, 2  ;;  %v2755_v21 = vpop.f32.mrb[15].mxu0 }
0x1198   :  { %v1970_v22 = vadd.f32 %v1968_v20, %v3137_v31 }
0x119a   :  { %2990 = vtanh.f32 %v1970_v22  ;;  %v2524_v27 = vmul.f32 -1.442695, %v1970_v22 }
0x119b   :  { %2992 = vpow2.f32 %v2521_v24 }
0x119c   :  { %2994 = vpow2.f32 %v2524_v27 }
0x119e   :  { %v2989_v23 = vpop.eup %2988 }
0x119f   :  { %1807 = vrot.lane.b32.xlu0 %v2989_v23, %s3058_s0 }
0x11a4   :  { %v2991_v48 = vpop.eup %2990 }
0x11a5   :  { %1983 = vrot.lane.b32.xlu1 %v2991_v48, %s3058_s0  ;;  %v2993_v28 = vpop.eup %2992 }
0x11a6   :  { %v1801_v29 = vadd.f32 1.0, %v2993_v28  ;;  %v2995_v30 = vpop.eup %2994 }
0x11a7   :  { %v1974_v32 = vadd.f32 1.0, %v2995_v30 }
0x11a8   :  { %2996 = vrcp.f32 %v1801_v29 }
0x11a9   :  { %2998 = vrcp.f32 %v1974_v32 }
0x11b2   :  { %v2997_v33 = vpop.eup %2996 }
0x11b3   :  { %v2999_v36 = vpop.eup %2998  ;;  %v1805_v39 = vmul.f32 %v2997_v33, %v3326_v62 }
0x11b4   :  { %v1981_v43 = vmul.f32 %v2999_v36, %v1979_v42 }
0x1211   :  { %v1808_v34 = vpop.permute.xlu0 %1807 }
0x1212   :  { %v1810_v35 = vmul.f32 %v2997_v33, %v1808_v34 }
0x1214   :  { %1812 = vrot.lane.b32.xlu0 %v1810_v35, %s3059_s10 }
0x1217   :  { %v1984_v37 = vpop.permute.xlu1 %1983 }
0x1218   :  { %v1986_v38 = vmul.f32 %v2999_v36, %v1984_v37 }
0x121a   :  { %1988 = vrot.lane.b32.xlu1 %v1986_v38, %s3059_s10 }
0x1286   :  { %v1813_v40 = vpop.permute.xlu0 %1812 }
0x1287   :  { %v3363_v41 = vadd.f32 %v1813_v40, %v1805_v39 }
0x1289   :  { %3000 = vtanh.f32 %v3363_v41 }
0x128c   :  { %v1989_v44 = vpop.permute.xlu1 %1988 }
0x128d   :  { %v3367_v45 = vadd.f32 %v1989_v44, %v1981_v43 }
0x128f   :  { %3002 = vtanh.f32 %v3367_v45  ;;  %v2256_v18 = vrot.slane %v3367_v45, 7 }
0x1293   :  { %v3001_v46 = vpop.eup %3000 }
0x1294   :  { %1818 = vrot.lane.b32.xlu0 %v3001_v46, %s3060_s11  ;;  %v33_v46 = vld [vmem:[#allocation2 + $0x40] sm:$0xff] }
0x1299   :  { %v3003_v47 = vpop.eup %3002 }
0x129a   :  { %1994 = vrot.lane.b32.xlu1 %v3003_v47, %s3060_s11 }
0x1306   :  { %v1819_v49 = vpop.permute.xlu0 %1818 }
0x1307   :  { %v1821_v51 = vmul.f32 %v2997_v33, %v1819_v49 }
0x1309   :  { %v2384_v52 = vrot.slane %v1821_v51, 3  ;;  %1823 = vrot.lane.b32.xlu0 %v1821_v51, %s3061_s12 }
0x130b   :  { %v3375_v53 = vsel %vm81_vm5, %v3338_v10, %v2384_v52 }
0x130c   :  { %v1995_v54 = vpop.permute.xlu1 %1994 }
0x130d   :  { %v1997_v56 = vmul.f32 %v2999_v36, %v1995_v54 }
0x130f   :  { %v1999_v57 = vrot.slane %v1997_v56, 6 }
0x1311   :  { %2000 = vrot.lane.b32.xlu1 %v1999_v57, %s3061_s12  ;;  %v2532_v57 = vld [vmem:[#allocation2 + $0x58] ss:$0 sm:$0xff] }
0x137b   :  { %v1824_v26 = vpop.permute.xlu0 %1823 }
0x137c   :  { %2747 = vmatmul.mubr.msk.f32.vlgmr.msra.gmra.mrb[12].mxu1 %vm168_vm9, %v1824_v26 }
0x137d   :  { %2853 = vmatpush3.bf16.msra.mxu1 %v3148_v50  ;;  %2760 = vmatprep.mubr.msk.f32.mxu1 %vm3056_vm0, %v3055_v0 }
0x137e   :  { %2857 = vmatprep.subr.bf16.mxu1 %v3057_v1 }
0x1383   :  { %v2001_v58 = vpop.permute.xlu1 %2000 }
0x1384   :  { %2761 = vmatmul.mubr.msk.f32.vlgmr.msra.gmra.mrb[12].mxu1 %vm168_vm9, %v2001_v58 }
0x1385   :  { %2859 = vmatpush3.bf16.msra.mxu1 %v3126_v25  ;;  %2774 = vmatprep.mubr.msk.f32.mxu1 %vm3056_vm0, %v3055_v0 }
0x1386   :  { %2863 = vmatprep.subr.bf16.mxu1 %v3057_v1 }
0x1388   :  { %2775 = vmatmul.mubr.msk.f32.vlgmr.msra.gmra.mrb[14].mxu1 %vm168_vm9, %v2001_v58 }
0x1389   :  { %2788 = vmatprep.mubr.msk.f32.mxu1 %vm3056_vm0, %v3055_v0 }
0x1457   :  { %v2070_v59 = vpop.f32.mrb[12].mxu1 }
0x1458   :  { %v2872_v60 = vadd.f32 %v2070_v59, %v3170_v55  ;;  %v2762_v61 = vpop.f32.mrb[13].mxu1 }
0x145a   :  { %3004 = vtanh.f32 %v2872_v60  ;;  %v2526_v4 = vmul.f32 -1.442695, %v2872_v60 }
0x145b   :  { %v2240_v62 = vpop.f32.mrb[14].mxu1 }
0x145c   :  { %v2245_v63 = vrot.slane %v2240_v62, 1  ;;  %v2776_v2 = vpop.f32.mrb[15].mxu1 }
0x145e   :  { %v2247_v25 = vadd.f32 %v2245_v63, %v3137_v31 }
0x1460   :  { %3006 = vtanh.f32 %v2247_v25  ;;  %v2529_v5 = vmul.f32 -1.442695, %v2247_v25 }
0x1461   :  { %3008 = vpow2.f32 %v2526_v4 }
0x1462   :  { %3010 = vpow2.f32 %v2529_v5 }
0x1464   :  { %v3005_v3 = vpop.eup %3004 }
0x1465   :  { %2084 = vrot.lane.b32.xlu0 %v3005_v3, %s3058_s0 }
0x146a   :  { %v3007_v1 = vpop.eup %3006 }
0x146b   :  { %2260 = vrot.lane.b32.xlu1 %v3007_v1, %s3058_s0  ;;  %v3009_v6 = vpop.eup %3008 }
0x146c   :  { %v2078_v7 = vadd.f32 1.0, %v3009_v6  ;;  %v3011_v8 = vpop.eup %3010 }
0x146d   :  { %v2251_v9 = vadd.f32 1.0, %v3011_v8 }
0x146e   :  { %3012 = vrcp.f32 %v2078_v7 }
0x146f   :  { %3014 = vrcp.f32 %v2251_v9 }
0x1478   :  { %v3013_v10 = vpop.eup %3012 }
0x1479   :  { %v3015_v12 = vpop.eup %3014  ;;  %v2082_v15 = vmul.f32 %v3013_v10, %v3363_v41 }
0x147a   :  { %v2258_v19 = vmul.f32 %v3015_v12, %v2256_v18 }
0x14d7   :  { %v2085_v11 = vpop.permute.xlu0 %2084 }
0x14d8   :  { %v2087_v31 = vmul.f32 %v3013_v10, %v2085_v11 }
0x14da   :  { %2089 = vrot.lane.b32.xlu0 %v2087_v31, %s3059_s10 }
0x14dd   :  { %v2261_v13 = vpop.permute.xlu1 %2260 }
0x14de   :  { %v2263_v14 = vmul.f32 %v3015_v12, %v2261_v13 }
0x14e0   :  { %2265 = vrot.lane.b32.xlu1 %v2263_v14, %s3059_s10 }
0x154c   :  { %v2090_v16 = vpop.permute.xlu0 %2089 }
0x154d   :  { %v2092_v17 = vadd.f32 %v2090_v16, %v2082_v15 }
0x154f   :  { %3016 = vtanh.f32 %v2092_v17 }
0x1552   :  { %v2266_v20 = vpop.permute.xlu1 %2265 }
0x1553   :  { %v2268_v21 = vadd.f32 %v2266_v20, %v2258_v19 }
0x1555   :  { %3018 = vtanh.f32 %v2268_v21 }
0x1559   :  { %v3017_v22 = vpop.eup %3016 }
0x155a   :  { %2095 = vrot.lane.b32.xlu0 %v3017_v22, %s3060_s11 }
0x155f   :  { %v3019_v23 = vpop.eup %3018 }
0x1560   :  { %2271 = vrot.lane.b32.xlu1 %v3019_v23, %s3060_s11 }
0x15cc   :  { %v2096_v48 = vpop.permute.xlu0 %2095 }
0x15cd   :  { %v2098_v24 = vmul.f32 %v3013_v10, %v2096_v48 }
0x15cf   :  { %v2386_v27 = vrot.slane %v2098_v24, 2  ;;  %2100 = vrot.lane.b32.xlu0 %v2098_v24, %s3061_s12 }
0x15d1   :  { %v2396_v28 = vsel %vm83_vm6, %v3375_v53, %v2386_v27 }
0x15d2   :  { %v2272_v29 = vpop.permute.xlu1 %2271 }
0x15d3   :  { %v2274_v30 = vmul.f32 %v3015_v12, %v2272_v29 }
0x15d5   :  { %v2276_v32 = vrot.slane %v2274_v30, 7 }
0x15d7   :  { %2277 = vrot.lane.b32.xlu1 %v2276_v32, %s3061_s12 }
0x1641   :  { %v2101_v33 = vpop.permute.xlu0 %2100 }
0x1642   :  { %2768 = vmatmul.mubr.msk.f32.vlgmr.msra.gmra.mrb[16].mxu0 %vm168_vm9, %v2101_v33 }
0x1643   :  { %2862 = vmatpush3.bf16.msra.mxu0 %v3148_v50  ;;  %2781 = vmatprep.mubr.msk.f32.mxu0 %vm3056_vm0, %v3055_v0 }
0x1649   :  { %v2278_v34 = vpop.permute.xlu1 %2277 }
0x164a   :  { %2782 = vmatmul.mubr.msk.f32.vlgmr.msra.gmra.mrb[16].mxu0 %vm168_vm9, %v2278_v34 }
0x171d   :  { %v2347_v35 = vpop.f32.mrb[16].mxu0 }
0x171e   :  { %v2873_v36 = vadd.f32 %v2347_v35, %v3170_v55  ;;  %v2783_v37 = vpop.f32.mrb[17].mxu0  ;;  %v32_v55 = vld [vmem:[#allocation2 + $0x38] sm:$0xff] }
0x171f   :  { %v2864_v47 = vpack.c.bf16 %v33_v46, %v32_v55 }
0x1720   :  { %3020 = vtanh.f32 %v2873_v36  ;;  %v2531_v39 = vmul.f32 -1.442695, %v2873_v36 }
0x1721   :  { %2865 = vmatpush3.bf16.msra.mxu1 %v2864_v47 }
0x1722   :  { %3022 = vpow2.f32 %v2531_v39 }
0x172a   :  { %v3021_v38 = vpop.eup %3020 }
0x172b   :  { %2361 = vrot.lane.b32.xlu0 %v3021_v38, %s3058_s0 }
0x172c   :  { %v3023_v40 = vpop.eup %3022 }
0x172d   :  { %v2355_v41 = vadd.f32 1.0, %v3023_v40 }
0x172f   :  { %3024 = vrcp.f32 %v2355_v41 }
0x1739   :  { %v3025_v50 = vpop.eup %3024 }
0x173a   :  { %v2359_v0 = vmul.f32 %v3025_v50, %v2092_v17 }
0x179d   :  { %v2362_v42 = vpop.permute.xlu0 %2361 }
0x179e   :  { %v2364_v43 = vmul.f32 %v3025_v50, %v2362_v42 }
0x17a0   :  { %2366 = vrot.lane.b32.xlu1 %v2364_v43, %s3059_s10 }
0x1812   :  { %v2367_v44 = vpop.permute.xlu1 %2366 }
0x1813   :  { %v2369_v45 = vadd.f32 %v2367_v44, %v2359_v0 }
0x1815   :  { %3026 = vtanh.f32 %v2369_v45 }
0x181f   :  { %v3027_v49 = vpop.eup %3026 }
0x1820   :  { %2372 = vrot.lane.b32.xlu0 %v3027_v49, %s3060_s11 }
0x1892   :  { %v2373_v51 = vpop.permute.xlu0 %2372 }
0x1893   :  { %v2375_v52 = vmul.f32 %v3025_v50, %v2373_v51 }
0x1895   :  { %v2389_v53 = vrot.slane %v2375_v52, 1 }
0x1897   :  { %v2397_v54 = vsel %vm85_vm7, %v2396_v28, %v2389_v53 }
0x1898   :  { %2403 = vrot.lane.b32.xlu1 %v2397_v54, %s3061_s12 }
0x190a   :  { %v2404_v56 = vpop.permute.xlu1 %2403 }
0x190b   :  { %2789 = vmatmul.mubr.msk.f32.vlgmr.msra.gmra.mrb[16].mxu1 %vm168_vm9, %v2404_v56 }
0x19de   :  { %v2473_v26 = vpop.f32.mrb[16].mxu1 }
0x19df   :  { %v2474_v58 = vadd.f32 %v2532_v57, %v2473_v26  ;;  %v2790_v59 = vpop.f32.mrb[17].mxu1 }
0x19e1   :  { %2478 = vst.msk [vmem:[%s3422_s2] sm:$0xff] %vm2477_vm10, %v2474_v58 }
0x19e2   :  { %2483 = vsyncpa [#allocation3], 1 }

</bundles_post_ra>
